<compile_context>
chip_gen: v7x
topology: tpu7x:2x2x1
jax: 0.10.0
libtpu: 0.0.40
codegen_flags: <defaults>
</compile_context>

<pallas_src>
import functools

import jax
import jax.numpy as jnp
from jax.experimental import pallas as pl
from jax.experimental.pallas import tpu as pltpu


def _round_up(v, m):
    return (v + m - 1) // m * m


def _pick_tn():
    """256 nodes/tile on 256-wide-MXU parts (v6e/v7x), 128 otherwise (safe fallback)."""
    try:
        kind = jax.devices()[0].device_kind.lower()
    except Exception:
        return 128
    return 256 if ("v6" in kind or "v7" in kind) else 128


def node_model_kernel(es_ref, ec_ref,                    # SMEM scalar prefetch (per node tile)
                      ea_ref,                            # (F+1, TE) feature-major: features + ones row
                      em_ref,                            # (TE, F+1) edge-major: features + col (as f32)
                      x_ref, ug_ref,                     # (node_in, TN), (1, TN)
                      w1f_ref, w1u_ref, b1_ref, w2_ref, b2_ref,
                      out_ref,                           # (node_out, TN)
                      sum_ref, max_ref,                  # scratch: (F+1, TN), (F, TN)
                      *, residuals, num_feats):
    F = num_feats
    TE = em_ref.shape[0]
    TN = x_ref.shape[1]
    n = pl.program_id(0)
    e = pl.program_id(1)
    neg = jnp.finfo(jnp.float32).min

    @pl.when(e == 0)
    def _():
        sum_ref[...] = jnp.zeros_like(sum_ref)
        max_ref[...] = jnp.full_like(max_ref, neg)

    # Only edge tiles inside this node tile's CSR window do any work.
    @pl.when(e < ec_ref[n])
    def _():
        # mask[j, i] = (col[j] == global node id of lane i); col rides in the
        # edge-major block (sublane-major), so no lane->sublane relayout.
        node_ids = (jax.lax.broadcasted_iota(jnp.int32, (TE, TN), 1)
                    + n * TN).astype(jnp.float32)
        col_f = em_ref[:, F:F + 1]                       # (TE, 1) target id (exact < 2**24)
        mask = col_f == node_ids                         # (TE, TN)
        mask_f = mask.astype(jnp.float32)

        # scatter_add + in-degree count in one MXU matmul (rows 0..F-1 sums, row F counts).
        sum_ref[...] += jnp.dot(ea_ref[...], mask_f, preferred_element_type=jnp.float32)

        # scatter_max: per-feature bounded 2-D select + sublane-max (no 3-D temporary).
        for f in range(F):
            cand = jnp.where(mask, em_ref[:, f:f + 1], neg)          # (TE, TN)
            red = jnp.max(cand, axis=0, keepdims=True)               # (1, TN)
            max_ref[f:f + 1, :] = jnp.maximum(max_ref[f:f + 1, :], red)

    @pl.when(e == pl.num_programs(1) - 1)
    def _():
        s = sum_ref[...]
        out1 = s[:F, :]                                   # scatter_add
        cnt = s[F:F + 1, :]                               # in-degree counts
        out3 = out1 / jnp.maximum(cnt, 1.0)               # scatter_mean
        out2 = jnp.where(cnt > 0.0, max_ref[...], 0.0)    # scatter_max, empty segment -> 0

        x = x_ref[...].astype(jnp.float32)
        ug = ug_ref[...].astype(jnp.float32)

        # Fused first Linear over concat([x, sum, max, mean]) + rank-1 u term + bias.
        feat = jnp.concatenate([x, out1, out2, out3], axis=0)        # (node_in+3F, TN)
        pre = jnp.dot(w1f_ref[...], feat, preferred_element_type=jnp.float32)
        pre = pre + w1u_ref[...] * ug + b1_ref[...]
        h = jnp.maximum(pre, 0.0)                                    # ReLU
        y = jnp.dot(w2_ref[...], h, preferred_element_type=jnp.float32) + b2_ref[...]
        if residuals:
            y = y + x
        out_ref[...] = y.astype(out_ref.dtype)


def node_model_forward(x, edge_index, edge_attr, u, batch, params, residuals=True):
    N, node_in = x.shape
    E, F = edge_attr.shape
    W1, b1, W2, b2 = params
    d_in, hid = W1.shape
    node_out = W2.shape[1]
    assert d_in == node_in + 3 * F + 1, "W1 must match concat([x, sum, max, mean, u])"
    assert u.shape[1] == 1, "module uses a single global feature per graph"
    if residuals:
        assert node_out == node_in, "residuals=True requires node_out == node_in"

    TN = _pick_tn()                       # nodes on lanes (lane-dense stores)
    TE = 512 if E >= 512 else 128         # edges per reduction step
    Np = _round_up(N, TN)
    Ep = _round_up(E, TE)
    n_nt = Np // TN
    n_et = Ep // TE

    f32 = jnp.float32

    # --- sort edges by target node so each node tile touches a contiguous edge-tile range.
    col = edge_index[1].astype(jnp.int32)
    order = jnp.argsort(col)
    col_s = col[order]
    ea_s = edge_attr[order].astype(f32)

    # Feature-major copy (+ ones row -> counts on the MXU), zero-padded.
    eaT = jnp.zeros((F + 1, Ep), f32)
    eaT = eaT.at[:F, :E].set(ea_s.T)
    eaT = eaT.at[F, :E].set(1.0)

    # Edge-major copy (+ col column, as float values), padded cols = -1 (never match).
    em = jnp.zeros((Ep, F + 1), f32)
    em = em.at[:E, :F].set(ea_s)
    em = em.at[:, F].set(-1.0)
    em = em.at[:E, F].set(col_s.astype(f32))

    # CSR-lite: per-edge-tile [min, max] col -> per-node-tile contiguous edge-tile window.
    col_min = jnp.full((Ep,), jnp.iinfo(jnp.int32).max, jnp.int32).at[:E].set(col_s)
    col_max = jnp.full((Ep,), -1, jnp.int32).at[:E].set(col_s)
    tmin = col_min.reshape(n_et, TE).min(axis=1)          # non-decreasing (sorted edges)
    tmax = col_max.reshape(n_et, TE).max(axis=1)          # non-decreasing
    starts = jnp.arange(n_nt, dtype=jnp.int32) * TN
    e_start = jnp.searchsorted(tmax, starts, side="left").astype(jnp.int32)
    e_end = jnp.searchsorted(tmin, starts + TN, side="left").astype(jnp.int32)
    e_count = jnp.maximum(e_end - e_start, 0).astype(jnp.int32)
    e_start = jnp.minimum(e_start, n_et - 1).astype(jnp.int32)

    # Feature-major node inputs (nodes on lanes).
    xT = jnp.zeros((node_in, Np), f32).at[:, :N].set(x.T.astype(f32))
    ug = u[batch.astype(jnp.int32)].astype(f32)           # (N, 1) gather: JAX glue
    ugT = jnp.zeros((1, Np), f32).at[:, :N].set(ug.T)

    # Transposed weights, u-column split off.
    w1f = W1[: node_in + 3 * F, :].T.astype(f32)          # (hid, node_in+3F)
    w1u = W1[node_in + 3 * F:, :].T.astype(f32)           # (hid, 1)
    b1c = b1.reshape(hid, 1).astype(f32)
    w2T = W2.T.astype(f32)                                # (node_out, hid)
    b2c = b2.reshape(node_out, 1).astype(f32)

    grid = (n_nt, n_et)
    kernel = functools.partial(node_model_kernel, residuals=residuals, num_feats=F)

    # Data-dependent edge-tile index: clamp to the node tile's window so steps
    # past the window repeat the last block index (no re-DMA) and get skipped.
    def edge_map_em(n, e, es, ec):
        last = jnp.maximum(ec[n] - 1, 0)
        return (es[n] + jnp.minimum(e, last), 0)

    def edge_map_fm(n, e, es, ec):
        last = jnp.maximum(ec[n] - 1, 0)
        return (0, es[n] + jnp.minimum(e, last))

    outT = pl.pallas_call(
        kernel,
        out_shape=jax.ShapeDtypeStruct((node_out, Np), x.dtype),
        grid_spec=pltpu.PrefetchScalarGridSpec(
            num_scalar_prefetch=2,
            grid=grid,
            in_specs=[
                pl.BlockSpec((F + 1, TE), edge_map_fm),                       # eaT tile
                pl.BlockSpec((TE, F + 1), edge_map_em),                       # edge-major tile
                pl.BlockSpec((node_in, TN), lambda n, e, es, ec: (0, n)),     # x tile
                pl.BlockSpec((1, TN), lambda n, e, es, ec: (0, n)),           # u[batch] tile
                pl.BlockSpec((hid, node_in + 3 * F), lambda n, e, es, ec: (0, 0)),  # W1 (feat)
                pl.BlockSpec((hid, 1), lambda n, e, es, ec: (0, 0)),          # W1 (u col)
                pl.BlockSpec((hid, 1), lambda n, e, es, ec: (0, 0)),          # b1
                pl.BlockSpec((node_out, hid), lambda n, e, es, ec: (0, 0)),   # W2
                pl.BlockSpec((node_out, 1), lambda n, e, es, ec: (0, 0)),     # b2
            ],
            out_specs=pl.BlockSpec((node_out, TN), lambda n, e, es, ec: (0, n)),
            scratch_shapes=[
                pltpu.VMEM((F + 1, TN), jnp.float32),    # sums + counts accumulator
                pltpu.VMEM((F, TN), jnp.float32),        # running max accumulator
            ],
        ),
        compiler_params=pltpu.CompilerParams(
            dimension_semantics=("parallel", "arbitrary"),
            vmem_limit_bytes=32 * 1024 * 1024,           # well inside 64 MiB physical on v7x
        ),
    )(e_start, e_count, eaT, em, xT, ugT, w1f, w1u, b1c, w2T, b2c)

    return outT[:, :N].T.astype(x.dtype)


def node_model_reference(x, edge_index, edge_attr, u, batch, params, residuals=True):
    """Pure-JAX reference mirroring torch_scatter + nn.Sequential semantics."""
    W1, b1, W2, b2 = params
    N = x.shape[0]
    col = edge_index[1]
    out1 = jax.ops.segment_sum(edge_attr, col, num_segments=N)
    cnt = jax.ops.segment_sum(jnp.ones((edge_attr.shape[0],), jnp.float32),
                              col, num_segments=N)
    out3 = out1 / jnp.maximum(cnt, 1.0)[:, None]
    out2 = jax.ops.segment_max(edge_attr, col, num_segments=N)
    out2 = jnp.where(cnt[:, None] > 0, out2, 0.0)
    h = jnp.concatenate([x, out1, out2, out3, u[batch]], axis=1)
    h = jnp.maximum(h @ W1 + b1, 0.0)
    y = h @ W2 + b2
    if residuals:
        y = y + x
    return y


if __name__ == "__main__":
    # Small shapes implied by the forward pass, big enough to exercise the grid
    # (multiple node tiles and edge tiles).
    N = 200          # nodes
    E = 300          # edges
    node_in = 8
    node_out = 8     # residuals=True requires node_out == node_in
    edge_out = 8
    hid = 32
    B = 3            # graphs in the batch (1 global feature per graph)
    d_in = node_in + 3 * edge_out + 1

    key = jax.random.PRNGKey(0)
    k = jax.random.split(key, 8)

    x = jax.random.normal(k[0], (N, node_in), jnp.float32)
    edge_index = jax.random.randint(k[1], (2, E), 0, N, dtype=jnp.int32)
    edge_attr = jax.random.normal(k[2], (E, edge_out), jnp.float32)
    u = jax.random.normal(k[3], (B, 1), jnp.float32)
    batch = jnp.minimum(jnp.arange(N, dtype=jnp.int32) * B // N, B - 1).astype(jnp.int32)

    W1 = jax.random.normal(k[4], (d_in, hid), jnp.float32) * 0.1
    b1 = jax.random.normal(k[5], (hid,), jnp.float32) * 0.1
    W2 = jax.random.normal(k[6], (hid, node_out), jnp.float32) * 0.1
    b2 = jax.random.normal(k[7], (node_out,), jnp.float32) * 0.1
    params = (W1, b1, W2, b2)

    out = node_model_forward(x, edge_index, edge_attr, u, batch, params)
    out = jax.block_until_ready(out)

    ref = node_model_reference(x, edge_index, edge_attr, u, batch, params)
    assert out.shape == (N, node_out)
    assert jnp.allclose(out, ref, atol=1e-4, rtol=1e-4), "mismatch vs. pure-JAX reference"

    print("KERNEL_OK")
</pallas_src>

<mosaic_0001>
module attributes {stable_mosaic.version = 11 : i64} {
  func.func @node_model_kernel(%arg0: i32, %arg1: i32, %arg2: memref<2xi32, #tpu.memory_space<smem>>, %arg3: memref<2xi32, #tpu.memory_space<smem>>, %arg4: memref<9x128xf32, #tpu.memory_space<vmem>>, %arg5: memref<128x9xf32, #tpu.memory_space<vmem>>, %arg6: memref<8x128xf32, #tpu.memory_space<vmem>>, %arg7: memref<1x128xf32, #tpu.memory_space<vmem>>, %arg8: memref<32x32xf32, #tpu.memory_space<vmem>>, %arg9: memref<32x1xf32, #tpu.memory_space<vmem>>, %arg10: memref<32x1xf32, #tpu.memory_space<vmem>>, %arg11: memref<8x32xf32, #tpu.memory_space<vmem>>, %arg12: memref<8x1xf32, #tpu.memory_space<vmem>>, %arg13: memref<8x128xf32, #tpu.memory_space<vmem>>, %arg14: memref<9x128xf32, #tpu.memory_space<vmem>>, %arg15: memref<8x128xf32, #tpu.memory_space<vmem>>) attributes {dimension_semantics = [#tpu.dimension_semantics<parallel>, #tpu.dimension_semantics<arbitrary>], iteration_bounds = array<i64: 2, 3>, scalar_prefetch = 2 : i64, scratch_operands = 2 : i64, tpu.core_type = #tpu.core_type<tc>, window_params = [{transform_indices = @transform_0, window_bounds = array<i64: 9, 128>}, {transform_indices = @transform_1, window_bounds = array<i64: 128, 9>}, {transform_indices = @transform_2, window_bounds = array<i64: 8, 128>}, {transform_indices = @transform_3, window_bounds = array<i64: 1, 128>}, {pipeline_mode = #tpu.pipeline_mode<synchronous>, transform_indices = @transform_4, window_bounds = array<i64: 32, 32>}, {pipeline_mode = #tpu.pipeline_mode<synchronous>, transform_indices = @transform_5, window_bounds = array<i64: 32, 1>}, {pipeline_mode = #tpu.pipeline_mode<synchronous>, transform_indices = @transform_6, window_bounds = array<i64: 32, 1>}, {pipeline_mode = #tpu.pipeline_mode<synchronous>, transform_indices = @transform_7, window_bounds = array<i64: 8, 32>}, {pipeline_mode = #tpu.pipeline_mode<synchronous>, transform_indices = @transform_8, window_bounds = array<i64: 8, 1>}, {transform_indices = @transform_9, window_bounds = array<i64: 8, 128>}]} {
    %c0_i32 = arith.constant 0 : i32
    %0 = arith.cmpi eq, %arg1, %c0_i32 : i32
    %1 = arith.extui %0 : i1 to i32
    %c0_i32_0 = arith.constant 0 : i32
    %2 = arith.cmpi ne, %1, %c0_i32_0 : i32
    scf.if %2 {
      %cst = arith.constant 0.000000e+00 : f32
      %11 = vector.broadcast %cst : f32 to vector<9x128xf32>
      %c0 = arith.constant 0 : index
      %c0_3 = arith.constant 0 : index
      %12 = vector.load %arg14[%c0, %c0_3] : memref<9x128xf32, #tpu.memory_space<vmem>>, vector<9x128xf32>
      tpu.vector_store %arg14[%c0, %c0_3], %11 {strides = array<i32>} : memref<9x128xf32, #tpu.memory_space<vmem>>, vector<9x128xf32>,
      %cst_4 = arith.constant -3.40282347E+38 : f32
      %13 = vector.broadcast %cst_4 : f32 to vector<8x128xf32>
      %c0_5 = arith.constant 0 : index
      %c0_6 = arith.constant 0 : index
      %14 = vector.load %arg15[%c0_5, %c0_6] : memref<8x128xf32, #tpu.memory_space<vmem>>, vector<8x128xf32>
      tpu.vector_store %arg15[%c0_5, %c0_6], %13 {strides = array<i32>} : memref<8x128xf32, #tpu.memory_space<vmem>>, vector<8x128xf32>,
    } else {
    }
    %3 = arith.index_cast %arg0 : i32 to index
    %4 = memref.load %arg3[%3] : memref<2xi32, #tpu.memory_space<smem>>
    %5 = arith.cmpi slt, %arg1, %4 : i32
    %6 = arith.extui %5 : i1 to i32
    %c0_i32_1 = arith.constant 0 : i32
    %7 = arith.cmpi ne, %6, %c0_i32_1 : i32
    scf.if %7 {
      %11 = tpu.iota {dimensions = array<i32: 1>} : vector<128x128xi32>
      %c128_i32 = arith.constant 128 : i32
      %12 = arith.muli %arg0, %c128_i32 : i32
      %13 = vector.broadcast %12 : i32 to vector<128x128xi32>
      %14 = arith.addi %11, %13 : vector<128x128xi32>
      %15 = arith.sitofp %14 : vector<128x128xi32> to vector<128x128xf32>
      %c0 = arith.constant 0 : index
      %c8 = arith.constant 8 : index
      %16 = vector.load %arg5[%c0, %c8] : memref<128x9xf32, #tpu.memory_space<vmem>>, vector<128x1xf32>
      %17 = vector.broadcast %16 : vector<128x1xf32> to vector<128x128xf32>
      %18 = arith.cmpf oeq, %17, %15 : vector<128x128xf32>
      %19 = arith.extui %18 : vector<128x128xi1> to vector<128x128xi32>
      %20 = arith.sitofp %19 : vector<128x128xi32> to vector<128x128xf32>
      %c0_3 = arith.constant 0 : index
      %c0_4 = arith.constant 0 : index
      %21 = vector.load %arg14[%c0_3, %c0_4] : memref<9x128xf32, #tpu.memory_space<vmem>>, vector<9x128xf32>
      %c0_5 = arith.constant 0 : index
      %c0_6 = arith.constant 0 : index
      %22 = vector.load %arg4[%c0_5, %c0_6] : memref<9x128xf32, #tpu.memory_space<vmem>>, vector<9x128xf32>
      %cst = arith.constant dense<0.000000e+00> : vector<9x128xf32>
      %23 = tpu.matmul %22, %20, %cst {dimension_numbers = #tpu.dot_dimension_numbers<[1], [0], [0], [1], [0, 0, 1, 1], [], []>} : vector<9x128xf32>, vector<128x128xf32>, vector<9x128xf32> -> vector<9x128xf32>
      %24 = arith.addf %21, %23 : vector<9x128xf32>
      %c0_7 = arith.constant 0 : index
      %c0_8 = arith.constant 0 : index
      %25 = vector.load %arg14[%c0_7, %c0_8] : memref<9x128xf32, #tpu.memory_space<vmem>>, vector<9x128xf32>
      tpu.vector_store %arg14[%c0_7, %c0_8], %24 {strides = array<i32>} : memref<9x128xf32, #tpu.memory_space<vmem>>, vector<9x128xf32>,
      %c0_9 = arith.constant 0 : index
      %c0_10 = arith.constant 0 : index
      %26 = vector.load %arg5[%c0_9, %c0_10] : memref<128x9xf32, #tpu.memory_space<vmem>>, vector<128x1xf32>
      %cst_11 = arith.constant -3.40282347E+38 : f32
      %27 = vector.shape_cast %26 : vector<128x1xf32> to vector<128x1xf32>
      %28 = vector.broadcast %27 : vector<128x1xf32> to vector<128x128xf32>
      %29 = vector.broadcast %cst_11 : f32 to vector<128x128xf32>
      %30 = arith.select %18, %28, %29 : vector<128x128xi1>, vector<128x128xf32>
      %cst_12 = arith.constant dense<0xFF800000> : vector<128xf32>
      %31 = vector.multi_reduction <maximumf>, %30, %cst_12 [0] : vector<128x128xf32> to vector<128xf32>
      %32 = vector.shape_cast %31 : vector<128xf32> to vector<1x128xf32>
      %c0_13 = arith.constant 0 : index
      %c0_14 = arith.constant 0 : index
      %33 = vector.load %arg15[%c0_13, %c0_14] : memref<8x128xf32, #tpu.memory_space<vmem>>, vector<1x128xf32>
      %34 = arith.maximumf %33, %32 : vector<1x128xf32>
      %c0_15 = arith.constant 0 : index
      %c0_16 = arith.constant 0 : index
      %35 = vector.load %arg15[%c0_15, %c0_16] : memref<8x128xf32, #tpu.memory_space<vmem>>, vector<1x128xf32>
      tpu.vector_store %arg15[%c0_15, %c0_16], %34 {strides = array<i32>} : memref<8x128xf32, #tpu.memory_space<vmem>>, vector<1x128xf32>,
      %c0_17 = arith.constant 0 : index
      %c1 = arith.constant 1 : index
      %36 = vector.load %arg5[%c0_17, %c1] : memref<128x9xf32, #tpu.memory_space<vmem>>, vector<128x1xf32>
      %cst_18 = arith.constant -3.40282347E+38 : f32
      %37 = vector.shape_cast %36 : vector<128x1xf32> to vector<128x1xf32>
      %38 = vector.broadcast %37 : vector<128x1xf32> to vector<128x128xf32>
      %39 = vector.broadcast %cst_18 : f32 to vector<128x128xf32>
      %40 = arith.select %18, %38, %39 : vector<128x128xi1>, vector<128x128xf32>
      %cst_19 = arith.constant dense<0xFF800000> : vector<128xf32>
      %41 = vector.multi_reduction <maximumf>, %40, %cst_19 [0] : vector<128x128xf32> to vector<128xf32>
      %42 = vector.shape_cast %41 : vector<128xf32> to vector<1x128xf32>
      %c1_20 = arith.constant 1 : index
      %c0_21 = arith.constant 0 : index
      %43 = vector.load %arg15[%c1_20, %c0_21] : memref<8x128xf32, #tpu.memory_space<vmem>>, vector<1x128xf32>
      %44 = arith.maximumf %43, %42 : vector<1x128xf32>
      %c1_22 = arith.constant 1 : index
      %c0_23 = arith.constant 0 : index
      %45 = vector.load %arg15[%c1_22, %c0_23] : memref<8x128xf32, #tpu.memory_space<vmem>>, vector<1x128xf32>
      tpu.vector_store %arg15[%c1_22, %c0_23], %44 {strides = array<i32>} : memref<8x128xf32, #tpu.memory_space<vmem>>, vector<1x128xf32>,
      %c0_24 = arith.constant 0 : index
      %c2 = arith.constant 2 : index
      %46 = vector.load %arg5[%c0_24, %c2] : memref<128x9xf32, #tpu.memory_space<vmem>>, vector<128x1xf32>
      %cst_25 = arith.constant -3.40282347E+38 : f32
      %47 = vector.shape_cast %46 : vector<128x1xf32> to vector<128x1xf32>
      %48 = vector.broadcast %47 : vector<128x1xf32> to vector<128x128xf32>
      %49 = vector.broadcast %cst_25 : f32 to vector<128x128xf32>
      %50 = arith.select %18, %48, %49 : vector<128x128xi1>, vector<128x128xf32>
      %cst_26 = arith.constant dense<0xFF800000> : vector<128xf32>
      %51 = vector.multi_reduction <maximumf>, %50, %cst_26 [0] : vector<128x128xf32> to vector<128xf32>
      %52 = vector.shape_cast %51 : vector<128xf32> to vector<1x128xf32>
      %c2_27 = arith.constant 2 : index
      %c0_28 = arith.constant 0 : index
      %53 = vector.load %arg15[%c2_27, %c0_28] : memref<8x128xf32, #tpu.memory_space<vmem>>, vector<1x128xf32>
      %54 = arith.maximumf %53, %52 : vector<1x128xf32>
      %c2_29 = arith.constant 2 : index
      %c0_30 = arith.constant 0 : index
      %55 = vector.load %arg15[%c2_29, %c0_30] : memref<8x128xf32, #tpu.memory_space<vmem>>, vector<1x128xf32>
      tpu.vector_store %arg15[%c2_29, %c0_30], %54 {strides = array<i32>} : memref<8x128xf32, #tpu.memory_space<vmem>>, vector<1x128xf32>,
      %c0_31 = arith.constant 0 : index
      %c3 = arith.constant 3 : index
      %56 = vector.load %arg5[%c0_31, %c3] : memref<128x9xf32, #tpu.memory_space<vmem>>, vector<128x1xf32>
      %cst_32 = arith.constant -3.40282347E+38 : f32
      %57 = vector.shape_cast %56 : vector<128x1xf32> to vector<128x1xf32>
      %58 = vector.broadcast %57 : vector<128x1xf32> to vector<128x128xf32>
      %59 = vector.broadcast %cst_32 : f32 to vector<128x128xf32>
      %60 = arith.select %18, %58, %59 : vector<128x128xi1>, vector<128x128xf32>
      %cst_33 = arith.constant dense<0xFF800000> : vector<128xf32>
      %61 = vector.multi_reduction <maximumf>, %60, %cst_33 [0] : vector<128x128xf32> to vector<128xf32>
      %62 = vector.shape_cast %61 : vector<128xf32> to vector<1x128xf32>
      %c3_34 = arith.constant 3 : index
      %c0_35 = arith.constant 0 : index
      %63 = vector.load %arg15[%c3_34, %c0_35] : memref<8x128xf32, #tpu.memory_space<vmem>>, vector<1x128xf32>
      %64 = arith.maximumf %63, %62 : vector<1x128xf32>
      %c3_36 = arith.constant 3 : index
      %c0_37 = arith.constant 0 : index
      %65 = vector.load %arg15[%c3_36, %c0_37] : memref<8x128xf32, #tpu.memory_space<vmem>>, vector<1x128xf32>
      tpu.vector_store %arg15[%c3_36, %c0_37], %64 {strides = array<i32>} : memref<8x128xf32, #tpu.memory_space<vmem>>, vector<1x128xf32>,
      %c0_38 = arith.constant 0 : index
      %c4 = arith.constant 4 : index
      %66 = vector.load %arg5[%c0_38, %c4] : memref<128x9xf32, #tpu.memory_space<vmem>>, vector<128x1xf32>
      %cst_39 = arith.constant -3.40282347E+38 : f32
      %67 = vector.shape_cast %66 : vector<128x1xf32> to vector<128x1xf32>
      %68 = vector.broadcast %67 : vector<128x1xf32> to vector<128x128xf32>
      %69 = vector.broadcast %cst_39 : f32 to vector<128x128xf32>
      %70 = arith.select %18, %68, %69 : vector<128x128xi1>, vector<128x128xf32>
      %cst_40 = arith.constant dense<0xFF800000> : vector<128xf32>
      %71 = vector.multi_reduction <maximumf>, %70, %cst_40 [0] : vector<128x128xf32> to vector<128xf32>
      %72 = vector.shape_cast %71 : vector<128xf32> to vector<1x128xf32>
      %c4_41 = arith.constant 4 : index
      %c0_42 = arith.constant 0 : index
      %73 = vector.load %arg15[%c4_41, %c0_42] : memref<8x128xf32, #tpu.memory_space<vmem>>, vector<1x128xf32>
      %74 = arith.maximumf %73, %72 : vector<1x128xf32>
      %c4_43 = arith.constant 4 : index
      %c0_44 = arith.constant 0 : index
      %75 = vector.load %arg15[%c4_43, %c0_44] : memref<8x128xf32, #tpu.memory_space<vmem>>, vector<1x128xf32>
      tpu.vector_store %arg15[%c4_43, %c0_44], %74 {strides = array<i32>} : memref<8x128xf32, #tpu.memory_space<vmem>>, vector<1x128xf32>,
      %c0_45 = arith.constant 0 : index
      %c5 = arith.constant 5 : index
      %76 = vector.load %arg5[%c0_45, %c5] : memref<128x9xf32, #tpu.memory_space<vmem>>, vector<128x1xf32>
      %cst_46 = arith.constant -3.40282347E+38 : f32
      %77 = vector.shape_cast %76 : vector<128x1xf32> to vector<128x1xf32>
      %78 = vector.broadcast %77 : vector<128x1xf32> to vector<128x128xf32>
      %79 = vector.broadcast %cst_46 : f32 to vector<128x128xf32>
      %80 = arith.select %18, %78, %79 : vector<128x128xi1>, vector<128x128xf32>
      %cst_47 = arith.constant dense<0xFF800000> : vector<128xf32>
      %81 = vector.multi_reduction <maximumf>, %80, %cst_47 [0] : vector<128x128xf32> to vector<128xf32>
      %82 = vector.shape_cast %81 : vector<128xf32> to vector<1x128xf32>
      %c5_48 = arith.constant 5 : index
      %c0_49 = arith.constant 0 : index
      %83 = vector.load %arg15[%c5_48, %c0_49] : memref<8x128xf32, #tpu.memory_space<vmem>>, vector<1x128xf32>
      %84 = arith.maximumf %83, %82 : vector<1x128xf32>
      %c5_50 = arith.constant 5 : index
      %c0_51 = arith.constant 0 : index
      %85 = vector.load %arg15[%c5_50, %c0_51] : memref<8x128xf32, #tpu.memory_space<vmem>>, vector<1x128xf32>
      tpu.vector_store %arg15[%c5_50, %c0_51], %84 {strides = array<i32>} : memref<8x128xf32, #tpu.memory_space<vmem>>, vector<1x128xf32>,
      %c0_52 = arith.constant 0 : index
      %c6 = arith.constant 6 : index
      %86 = vector.load %arg5[%c0_52, %c6] : memref<128x9xf32, #tpu.memory_space<vmem>>, vector<128x1xf32>
      %cst_53 = arith.constant -3.40282347E+38 : f32
      %87 = vector.shape_cast %86 : vector<128x1xf32> to vector<128x1xf32>
      %88 = vector.broadcast %87 : vector<128x1xf32> to vector<128x128xf32>
      %89 = vector.broadcast %cst_53 : f32 to vector<128x128xf32>
      %90 = arith.select %18, %88, %89 : vector<128x128xi1>, vector<128x128xf32>
      %cst_54 = arith.constant dense<0xFF800000> : vector<128xf32>
      %91 = vector.multi_reduction <maximumf>, %90, %cst_54 [0] : vector<128x128xf32> to vector<128xf32>
      %92 = vector.shape_cast %91 : vector<128xf32> to vector<1x128xf32>
      %c6_55 = arith.constant 6 : index
      %c0_56 = arith.constant 0 : index
      %93 = vector.load %arg15[%c6_55, %c0_56] : memref<8x128xf32, #tpu.memory_space<vmem>>, vector<1x128xf32>
      %94 = arith.maximumf %93, %92 : vector<1x128xf32>
      %c6_57 = arith.constant 6 : index
      %c0_58 = arith.constant 0 : index
      %95 = vector.load %arg15[%c6_57, %c0_58] : memref<8x128xf32, #tpu.memory_space<vmem>>, vector<1x128xf32>
      tpu.vector_store %arg15[%c6_57, %c0_58], %94 {strides = array<i32>} : memref<8x128xf32, #tpu.memory_space<vmem>>, vector<1x128xf32>,
      %c0_59 = arith.constant 0 : index
      %c7 = arith.constant 7 : index
      %96 = vector.load %arg5[%c0_59, %c7] : memref<128x9xf32, #tpu.memory_space<vmem>>, vector<128x1xf32>
      %cst_60 = arith.constant -3.40282347E+38 : f32
      %97 = vector.shape_cast %96 : vector<128x1xf32> to vector<128x1xf32>
      %98 = vector.broadcast %97 : vector<128x1xf32> to vector<128x128xf32>
      %99 = vector.broadcast %cst_60 : f32 to vector<128x128xf32>
      %100 = arith.select %18, %98, %99 : vector<128x128xi1>, vector<128x128xf32>
      %cst_61 = arith.constant dense<0xFF800000> : vector<128xf32>
      %101 = vector.multi_reduction <maximumf>, %100, %cst_61 [0] : vector<128x128xf32> to vector<128xf32>
      %102 = vector.shape_cast %101 : vector<128xf32> to vector<1x128xf32>
      %c7_62 = arith.constant 7 : index
      %c0_63 = arith.constant 0 : index
      %103 = vector.load %arg15[%c7_62, %c0_63] : memref<8x128xf32, #tpu.memory_space<vmem>>, vector<1x128xf32>
      %104 = arith.maximumf %103, %102 : vector<1x128xf32>
      %c7_64 = arith.constant 7 : index
      %c0_65 = arith.constant 0 : index
      %105 = vector.load %arg15[%c7_64, %c0_65] : memref<8x128xf32, #tpu.memory_space<vmem>>, vector<1x128xf32>
      tpu.vector_store %arg15[%c7_64, %c0_65], %104 {strides = array<i32>} : memref<8x128xf32, #tpu.memory_space<vmem>>, vector<1x128xf32>,
    } else {
    }
    %c2_i32 = arith.constant 2 : i32
    %8 = arith.cmpi eq, %arg1, %c2_i32 : i32
    %9 = arith.extui %8 : i1 to i32
    %c0_i32_2 = arith.constant 0 : i32
    %10 = arith.cmpi ne, %9, %c0_i32_2 : i32
    scf.if %10 {
      %c0 = arith.constant 0 : index
      %c0_3 = arith.constant 0 : index
      %11 = vector.load %arg14[%c0, %c0_3] : memref<9x128xf32, #tpu.memory_space<vmem>>, vector<9x128xf32>
      %12 = vector.extract_strided_slice %11 {offsets = [0, 0], sizes = [8, 128], strides = [1, 1]} : vector<9x128xf32> to vector<8x128xf32>
      %13 = vector.extract_strided_slice %11 {offsets = [8, 0], sizes = [1, 128], strides = [1, 1]} : vector<9x128xf32> to vector<1x128xf32>
      %cst = arith.constant 1.000000e+00 : f32
      %14 = vector.broadcast %cst : f32 to vector<1x128xf32>
      %15 = arith.maximumf %13, %14 : vector<1x128xf32>
      %16 = vector.broadcast %15 : vector<1x128xf32> to vector<8x128xf32>
      %17 = arith.divf %12, %16 : vector<8x128xf32>
      %cst_4 = arith.constant 0.000000e+00 : f32
      %18 = vector.broadcast %cst_4 : f32 to vector<1x128xf32>
      %19 = arith.cmpf ogt, %13, %18 : vector<1x128xf32>
      %c0_5 = arith.constant 0 : index
      %c0_6 = arith.constant 0 : index
      %20 = vector.load %arg15[%c0_5, %c0_6] : memref<8x128xf32, #tpu.memory_space<vmem>>, vector<8x128xf32>
      %cst_7 = arith.constant 0.000000e+00 : f32
      %21 = vector.shape_cast %19 : vector<1x128xi1> to vector<1x128xi1>
      %22 = vector.broadcast %21 : vector<1x128xi1> to vector<8x128xi1>
      %23 = vector.broadcast %cst_7 : f32 to vector<8x128xf32>
      %24 = arith.select %22, %20, %23 : vector<8x128xi1>, vector<8x128xf32>
      %c0_8 = arith.constant 0 : index
      %c0_9 = arith.constant 0 : index
      %25 = vector.load %arg6[%c0_8, %c0_9] : memref<8x128xf32, #tpu.memory_space<vmem>>, vector<8x128xf32>
      %c0_10 = arith.constant 0 : index
      %c0_11 = arith.constant 0 : index
      %26 = vector.load %arg7[%c0_10, %c0_11] : memref<1x128xf32, #tpu.memory_space<vmem>>, vector<1x128xf32>
      %27 = tpu.concatenate %25, %12, %24, %17 in 0 : vector<8x128xf32>, vector<8x128xf32>, vector<8x128xf32>, vector<8x128xf32> -> vector<32x128xf32>
      %c0_12 = arith.constant 0 : index
      %c0_13 = arith.constant 0 : index
      %28 = vector.load %arg8[%c0_12, %c0_13] : memref<32x32xf32, #tpu.memory_space<vmem>>, vector<32x32xf32>
      %cst_14 = arith.constant dense<0.000000e+00> : vector<32x128xf32>
      %29 = tpu.matmul %28, %27, %cst_14 {dimension_numbers = #tpu.dot_dimension_numbers<[1], [0], [0], [1], [0, 0, 1, 1], [], []>} : vector<32x32xf32>, vector<32x128xf32>, vector<32x128xf32> -> vector<32x128xf32>
      %c0_15 = arith.constant 0 : index
      %c0_16 = arith.constant 0 : index
      %30 = vector.load %arg9[%c0_15, %c0_16] : memref<32x1xf32, #tpu.memory_space<vmem>>, vector<32x1xf32>
      %31 = vector.broadcast %30 : vector<32x1xf32> to vector<32x128xf32>
      %32 = vector.broadcast %26 : vector<1x128xf32> to vector<32x128xf32>
      %33 = arith.mulf %31, %32 : vector<32x128xf32>
      %34 = arith.addf %29, %33 : vector<32x128xf32>
      %c0_17 = arith.constant 0 : index
      %c0_18 = arith.constant 0 : index
      %35 = vector.load %arg10[%c0_17, %c0_18] : memref<32x1xf32, #tpu.memory_space<vmem>>, vector<32x1xf32>
      %36 = vector.broadcast %35 : vector<32x1xf32> to vector<32x128xf32>
      %37 = arith.addf %34, %36 : vector<32x128xf32>
      %cst_19 = arith.constant 0.000000e+00 : f32
      %38 = vector.broadcast %cst_19 : f32 to vector<32x128xf32>
      %39 = arith.maximumf %37, %38 : vector<32x128xf32>
      %c0_20 = arith.constant 0 : index
      %c0_21 = arith.constant 0 : index
      %40 = vector.load %arg11[%c0_20, %c0_21] : memref<8x32xf32, #tpu.memory_space<vmem>>, vector<8x32xf32>
      %cst_22 = arith.constant dense<0.000000e+00> : vector<8x128xf32>
      %41 = tpu.matmul %40, %39, %cst_22 {dimension_numbers = #tpu.dot_dimension_numbers<[1], [0], [0], [1], [0, 0, 1, 1], [], []>} : vector<8x32xf32>, vector<32x128xf32>, vector<8x128xf32> -> vector<8x128xf32>
      %c0_23 = arith.constant 0 : index
      %c0_24 = arith.constant 0 : index
      %42 = vector.load %arg12[%c0_23, %c0_24] : memref<8x1xf32, #tpu.memory_space<vmem>>, vector<8x1xf32>
      %43 = vector.broadcast %42 : vector<8x1xf32> to vector<8x128xf32>
      %44 = arith.addf %41, %43 : vector<8x128xf32>
      %45 = arith.addf %44, %25 : vector<8x128xf32>
      %c0_25 = arith.constant 0 : index
      %c0_26 = arith.constant 0 : index
      %46 = vector.load %arg13[%c0_25, %c0_26] : memref<8x128xf32, #tpu.memory_space<vmem>>, vector<8x128xf32>
      tpu.vector_store %arg13[%c0_25, %c0_26], %45 {strides = array<i32>} : memref<8x128xf32, #tpu.memory_space<vmem>>, vector<8x128xf32>,
    } else {
    }
    return
  }
  func.func @transform_0(%arg0: i32, %arg1: i32, %arg2: memref<2xi32, #tpu.memory_space<smem>>, %arg3: memref<2xi32, #tpu.memory_space<smem>>) -> (i32, i32) {
    %0 = arith.index_cast %arg0 : i32 to index
    %1 = memref.load %arg3[%0] : memref<2xi32, #tpu.memory_space<smem>>
    %c1_i32 = arith.constant 1 : i32
    %2 = arith.subi %1, %c1_i32 : i32
    %c0_i32 = arith.constant 0 : i32
    %3 = arith.maxsi %2, %c0_i32 : i32
    %4 = arith.index_cast %arg0 : i32 to index
    %5 = memref.load %arg2[%4] : memref<2xi32, #tpu.memory_space<smem>>
    %6 = arith.minsi %arg1, %3 : i32
    %7 = arith.addi %5, %6 : i32
    %c0_i32_0 = arith.constant 0 : i32
    %c0_i32_1 = arith.constant 0 : i32
    return %c0_i32_0, %7 : i32, i32
  }
  func.func @transform_1(%arg0: i32, %arg1: i32, %arg2: memref<2xi32, #tpu.memory_space<smem>>, %arg3: memref<2xi32, #tpu.memory_space<smem>>) -> (i32, i32) {
    %0 = arith.index_cast %arg0 : i32 to index
    %1 = memref.load %arg3[%0] : memref<2xi32, #tpu.memory_space<smem>>
    %c1_i32 = arith.constant 1 : i32
    %2 = arith.subi %1, %c1_i32 : i32
    %c0_i32 = arith.constant 0 : i32
    %3 = arith.maxsi %2, %c0_i32 : i32
    %4 = arith.index_cast %arg0 : i32 to index
    %5 = memref.load %arg2[%4] : memref<2xi32, #tpu.memory_space<smem>>
    %6 = arith.minsi %arg1, %3 : i32
    %7 = arith.addi %5, %6 : i32
    %c0_i32_0 = arith.constant 0 : i32
    %c0_i32_1 = arith.constant 0 : i32
    return %7, %c0_i32_0 : i32, i32
  }
  func.func @transform_2(%arg0: i32, %arg1: i32, %arg2: memref<2xi32, #tpu.memory_space<smem>>, %arg3: memref<2xi32, #tpu.memory_space<smem>>) -> (i32, i32) {
    %c0_i32 = arith.constant 0 : i32
    %c0_i32_0 = arith.constant 0 : i32
    return %c0_i32, %arg0 : i32, i32
  }
  func.func @transform_3(%arg0: i32, %arg1: i32, %arg2: memref<2xi32, #tpu.memory_space<smem>>, %arg3: memref<2xi32, #tpu.memory_space<smem>>) -> (i32, i32) {
    %c0_i32 = arith.constant 0 : i32
    %c0_i32_0 = arith.constant 0 : i32
    return %c0_i32, %arg0 : i32, i32
  }
  func.func @transform_4(%arg0: i32, %arg1: i32, %arg2: memref<2xi32, #tpu.memory_space<smem>>, %arg3: memref<2xi32, #tpu.memory_space<smem>>) -> (i32, i32) {
    %c0_i32 = arith.constant 0 : i32
    %c0_i32_0 = arith.constant 0 : i32
    %c0_i32_1 = arith.constant 0 : i32
    return %c0_i32, %c0_i32_0 : i32, i32
  }
  func.func @transform_5(%arg0: i32, %arg1: i32, %arg2: memref<2xi32, #tpu.memory_space<smem>>, %arg3: memref<2xi32, #tpu.memory_space<smem>>) -> (i32, i32) {
    %c0_i32 = arith.constant 0 : i32
    %c0_i32_0 = arith.constant 0 : i32
    %c0_i32_1 = arith.constant 0 : i32
    return %c0_i32, %c0_i32_0 : i32, i32
  }
  func.func @transform_6(%arg0: i32, %arg1: i32, %arg2: memref<2xi32, #tpu.memory_space<smem>>, %arg3: memref<2xi32, #tpu.memory_space<smem>>) -> (i32, i32) {
    %c0_i32 = arith.constant 0 : i32
    %c0_i32_0 = arith.constant 0 : i32
    %c0_i32_1 = arith.constant 0 : i32
    return %c0_i32, %c0_i32_0 : i32, i32
  }
  func.func @transform_7(%arg0: i32, %arg1: i32, %arg2: memref<2xi32, #tpu.memory_space<smem>>, %arg3: memref<2xi32, #tpu.memory_space<smem>>) -> (i32, i32) {
    %c0_i32 = arith.constant 0 : i32
    %c0_i32_0 = arith.constant 0 : i32
    %c0_i32_1 = arith.constant 0 : i32
    return %c0_i32, %c0_i32_0 : i32, i32
  }
  func.func @transform_8(%arg0: i32, %arg1: i32, %arg2: memref<2xi32, #tpu.memory_space<smem>>, %arg3: memref<2xi32, #tpu.memory_space<smem>>) -> (i32, i32) {
    %c0_i32 = arith.constant 0 : i32
    %c0_i32_0 = arith.constant 0 : i32
    %c0_i32_1 = arith.constant 0 : i32
    return %c0_i32, %c0_i32_0 : i32, i32
  }
  func.func @transform_9(%arg0: i32, %arg1: i32, %arg2: memref<2xi32, #tpu.memory_space<smem>>, %arg3: memref<2xi32, #tpu.memory_space<smem>>) -> (i32, i32) {
    %c0_i32 = arith.constant 0 : i32
    %c0_i32_0 = arith.constant 0 : i32
    return %c0_i32, %arg0 : i32, i32
  }
}

</mosaic_0001>

<bundles_post_ra>
// kernel: tpu_custom_call.1
= control target key start
LH: loop header
LB: loop body
LE: loop exit
PB: predicated region body
PF: predicated region fallthrough
CT: control target
= control target key end

     0   :  { %s3716_s0 = inlined_call_operand.vmem [shape: s32[2], index: 0, kind: input, shape index: {}]   ;;  %s3717_s2 = inlined_call_operand.vmem [shape: f32[9,384], index: 2, kind: input, shape index: {}]   ;;  %s3718_s3 = inlined_call_operand.vmem [shape: f32[384,9], index: 3, kind: input, shape index: {}]   ;;  %s3719_s4 = inlined_call_operand.vmem [shape: f32[8,256], index: 4, kind: input, shape index: {}]   ;;  %s3720_s5 = inlined_call_operand.vmem [shape: f32[1,256], index: 5, kind: input, shape index: {}]   ;;  %s3721_s6 = inlined_call_operand.vmem [shape: f32[32,32], index: 6, kind: input, shape index: {}]   ;;  %s3722_s7 = inlined_call_operand.vmem [shape: f32[32,1], index: 7, kind: input, shape index: {}]   ;;  %s3723_s8 = inlined_call_operand.vmem [shape: f32[32,1], index: 8, kind: input, shape index: {}]   ;;  %s3724_s9 = inlined_call_operand.vmem [shape: f32[8,32], index: 9, kind: input, shape index: {}]   ;;  %s3725_s10 = inlined_call_operand.vmem [shape: f32[8,1], index: 10, kind: input, shape index: {}]   ;;  %s3726_s11 = inlined_call_operand.hbm [shape: f32[8,256], index: 11, kind: output, shape index: {}]   ;;  %s3727_s1 = inlined_call_operand.vmem [shape: s32[2], index: 1, kind: input, shape index: {}]  }
   0x1   :  { %3743 = sst [smem:[#allocation17_spill]] %s3717_s2  ;;  %s16_s19 = sshll.u32 %s3716_s0, 4  ;;  %s17_s19 = int_to_ptr.vmem [resolvable:$true] %s16_s19 }
   0x2   :  { %3744 = sst [smem:[#allocation18_spill]] %s3718_s3  ;;  %s20_s22 = sshll.u32 %s3727_s1, 4  ;;  %s21_s22 = int_to_ptr.vmem [resolvable:$true] %s20_s22 }
   0x3   :  { %3745 = sst [smem:[#allocation19_spill]] %s3721_s6  ;;  %s2601_s23 = scalar_lea.vmem %s17_s19, 16 }
   0x4   :  { %3746 = sst [smem:[#allocation20_spill]] %s3722_s7  ;;  %p2602_p0 = scmp.ne.s32.totalorder %s17_s19, %s2601_s23 }
   0x5   :  { %3747 = sst [smem:[#allocation21_spill]] %s3723_s8  ;;  %p2606_p1 = scmp.lt.s32.totalorder %s17_s19, %s17_s19 }
   0x6   :  { %3748 = sst [smem:[#allocation22_spill]] %s3724_s9  ;;  %p2607_p2 = scmp.lt.s32.totalorder %s2601_s23, %s2601_s23 }
   0x7   :  { %3749 = sst [smem:[#allocation23_spill]] %s3725_s10 }
   0x8   :  { %3750 = sst [smem:[#allocation24_spill]] %s3726_s11  ;;  %p2608_p3 = por %p2607_p2, %p2606_p1 }
   0xa   :  { %p2609_p4 = pnand %p2608_p3, %p2602_p0 }
   0xc   :  { %2612 = shalt.err (!%p2609_p4)  }
   0xd   :  { %s2739_s24 = smov [#allocation5]   ;;  %s2613_s25 = scalar_lea.vmem %s21_s22, 16 }
   0xe   :  { %19 = dma.vmem_to_smem %s17_s19, 16, %s2739_s24, [#allocation4] }
   0xf   :  { %p2614_p5 = scmp.ne.s32.totalorder %s21_s22, %s2613_s25  ;;  %p2618_p6 = scmp.lt.s32.totalorder %s21_s22, %s21_s22 }
  0x10   :  { %p2619_p7 = scmp.lt.s32.totalorder %s2613_s25, %s2613_s25 }
  0x12   :  { %p2620_p8 = por %p2619_p7, %p2618_p6 }
  0x14   :  { %p2621_p9 = pnand %p2620_p8, %p2614_p5 }
  0x16   :  { %2624 = shalt.err (!%p2621_p9)  }
  0x17   :  { %s2740_s0 = smov [#allocation6]  }
  0x18   :  { %23 = dma.vmem_to_smem %s21_s22, 16, %s2740_s0, [#allocation4] }
  0x19   :  { %2693 = dma.done.wait [#allocation4], 32 }
  0x1a   :  { %2694 = vsyncadd [#allocation4], 4294967264 }
  0x1b   :  { %25 = sfence }
  0x1c   :  { %26 = vsyncpa [#allocation9], 0 }
  0x1d   :  { %28 = vsyncpa [#allocation9 + $0x1], 0  ;;  %s2825_s1 = smov 0   ;;  %s2827_s26 = smov 0  }
  0x1e   :  { %s2829_s27 = smov 0   ;;  %s2831_s28 = smov 0  }
  0x1f   :  { %s2833_s29 = smov 0   ;;  %s2835_s30 = smov 0  }
  0x20   :  { %s2837_s12 = smov 0   ;;  %s2839_s13 = smov 0  }
  0x21   :  { %s2841_s14 = smov 0   ;;  %s2843_s15 = smov 0  }
  0x22 LB: > { %3751 = sst [smem:[#allocation12_spill]] %s2701_s1  ;;  %s43_s16 = sadd.s32 1, %s2729_s13  ;;  %s2737_s15 = sphi %s2843_s15, %s34_s15   ;;  %s2733_s14 = sphi %s2841_s14, %s3808_s14   ;;  %s2729_s13 = sphi %s2839_s13, %s3815_s13   ;;  %s2725_s12 = sphi %s2837_s12, %s3806_s12   ;;  %s2721_s30 = sphi %s2835_s30, %s3814_s30   ;;  %s2717_s29 = sphi %s2833_s29, %s3813_s29   ;;  %s2713_s28 = sphi %s2831_s28, %s3812_s28   ;;  %s2709_s27 = sphi %s2829_s27, %s3811_s27   ;;  %s2705_s26 = sphi %s2827_s26, %s3810_s26   ;;  %s2701_s1 = sphi %s2825_s1, %s3809_s1  }
  0x23   : > { %3752 = sst [smem:[#allocation13_spill]] %s2733_s14  ;;  %s46_s17 = sadd.s32 1, %s2733_s14 }
  0x24   : > { %p44_p10 = scmp.ge.s32.totalorder %s43_s16, 3  ;;  %s50_s18 = sld [smem:[#allocation6 + %s2733_s14]] }
  0x25   : > { %s2265_s19 = sadd.s32 4294967295, %s2737_s15   ;;  %s2266_s20 = sadd.s32 4294967294, %s2737_s15  }
  0x26   : > { %s3817_s16 = smov (%p44_p10, %s43_s16), 0  ;;  %s3819_s17 = smov (!%p44_p10, %s46_s17), %s2733_s14 }
  0x27   : > { %3753 = sst [smem:[#allocation14_spill]] %s3817_s16  ;;  %p76_p11 = scmp.ne.s32.totalorder %s2717_s29, %s2713_s28 }
  0x28   : > { %p77_p12 = scmp.eq.s32.totalorder %s2737_s15, 0  ;;  %p48_p13 = scmp.ge.s32.totalorder %s3819_s17, 2 }
  0x29   : > { %s54_s21 = sld [smem:[#allocation5 + %s2733_s14]]  ;;  %s294_s24 = sadd.s32 1, %s2709_s27 }
  0x2a   : > { %s2267_s22 = sadd.s32 4294967295, %s50_s18  ;;  %p2887_p0 = por %p77_p12, %p76_p11 }
  0x2b   : > { %s3821_s17 = smov (%p48_p13, %s3819_s17), 0  ;;  %p52_p1 = scmp.gt.s32.totalorder %s2267_s22, 0 }
  0x2c   : > { %3755 = sst [smem:[#allocation15_spill]] %s3821_s17  ;;  %p304_p2 = scmp.ne.s32.totalorder %s2709_s27, %s2705_s26 }
  0x2d   : > { %s58_s25 = sld [smem:[#allocation6 + %s3821_s17]]  ;;  %s3823_s22 = smov (!%p52_p1, %s2267_s22), 0 }
  0x2e   : > { %s291_s0 = ssub.s32 %s2733_s14, %s3821_s17  ;;  %p305_p3 = scmp.eq.s32.totalorder %s2265_s19, 5 }
  0x2f   : > { %p55_p4 = scmp.lt.s32.totalorder %s2729_s13, %s3823_s22  ;;  %p292_p5 = scmp.eq.s32.totalorder %s291_s0, 0 }
  0x30   : > { %p2900_p6 = por %p305_p3, %p304_p2  ;;  %p310_p7 = scmp.ne.s32.totalorder %s2705_s26, %s2701_s1 }
  0x31   : > { %s56_s11 = scalar_select %p55_p4, %s2729_s13, %s3823_s22 }
  0x32   : > { %s3756_s18 = scalar_select %p2900_p6, 1, 0 }
  0x33   : > { %s2268_s9 = sadd.s32 4294967295, %s58_s25  ;;  %p311_p8 = scmp.eq.s32.totalorder %s2266_s20, 5 }
  0x34   : > { %3757 = sst [smem:[#allocation16_spill]] %s3756_s18  ;;  %p60_p9 = scmp.gt.s32.totalorder %s2268_s9, 0 }
  0x35   : > { %s62_s10 = sld [smem:[#allocation5 + %s3821_s17]]  ;;  %p2911_p10 = por %p311_p8, %p310_p7 }
  0x36   : > { %s2909_s8 = scalar_select %p292_p5, %s2709_s27, %s294_s24  }
  0x37   : > { %s3825_s9 = smov (!%p60_p9, %s2268_s9), 0  ;;  %s57_s19 = sadd.s32 %s56_s11, %s54_s21 }
  0x38   : > { %p63_p11 = scmp.lt.s32.totalorder %s3817_s16, %s3825_s9  ;;  %s69_s18 = sadd.s32 1, %s2717_s29 }
  0x39   : > { %p2272_p13 = scmp.ge.s32.totalorder %s2737_s15, 6 }
  0x3a   : > { %s64_s0 = scalar_select %p63_p11, %s3817_s16, %s3825_s9 }
  0x3b   : > { %342 = sbr.rel (%p2272_p13) target bundleno = 85 (0x55), region = 36 }
  0x3c   : > { %s65_s6 = sadd.s32 %s64_s0, %s62_s10 }
  0x3d   : > { %s66_s3 = ssub.s32 %s57_s19, %s65_s6 }
  0x3e   : > { %p67_p12 = scmp.eq.s32.totalorder %s66_s3, 0 }
  0x40   : > { %s2919_s1 = scalar_select %p67_p12, %s2717_s29, %s69_s18  }
  0x42   : > { %345 = sbr.rel (!%p2887_p0) target bundleno = 85 (0x55), region = 40  ;;  %s350_s20 = sld [smem:[#allocation6 + %s2733_s14]] (%p2887_p0) }
  0x43   : > { %s354_s9 = sld [smem:[#allocation5 + %s2733_s14]] (%p2887_p0)  ;;  %s347_s6 = sand.u32 (%p2887_p0), 1, %s2717_s29  }
  0x44   : > { %s2273_s3 = sshll.u32 (%p2887_p0), %s347_s6, 4  ;;  %s3759_s2 = sld [smem:[#allocation17_spill]] (%p2887_p0) }
  0x45   : > { %s349_s18 = scalar_lea.vmem (%p2887_p0), [#allocation7], %s2273_s3 }
  0x48   : > { %s2274_s11 = sadd.s32 (%p2887_p0), 4294967295, %s350_s20 }
  0x49   : > { %p352_p1 = scmp.gt.s32.totalorder %s2274_s11, 0 }
  0x4b   : > { %s3827_s11 = smov (!%p352_p1, %s2274_s11), 0 }
  0x4c   : > { %p355_p2 = scmp.lt.s32.totalorder %s2729_s13, %s3827_s11 }
  0x4e   : > { %s356_s10 = scalar_select %p355_p2, %s2729_s13, %s3827_s11 }
  0x50   : > { %s357_s21 = sadd.s32 %s356_s10, %s354_s9 }
  0x51   : > { %s2275_s22 = sshll.u32 %s357_s21, 3 }
  0x52   : > { %s359_s23 = scalar_lea.vmem %s3759_s2, %s2275_s22 }
  0x53   : > { %v389_v0 = vld [vmem:[%s359_s23] sm:$0xff]  ;;  %v391_v1 = vld [vmem:[%s359_s23 + $0x18] sm:$0xff] }
  0x54   : > { %390 = vst [vmem:[%s349_s18] sm:$0xff] %v389_v0  ;;  %392 = vst [vmem:[%s349_s18 + $0x8] sm:$0xff] %v391_v1 }
  0x55 PF: > { %p2276_p0 = scmp.ge.s32.totalorder %s2737_s15, 1  ;;  %p435_p3 = scmp.lt.s32.totalorder %s2737_s15, 7 }
  0x57   : > { %p436_p4 = pnand %p2276_p0, %p435_p3 }
  0x58   : > { %s442_s19 = sand.u32 (!%p436_p4), 1, %s2713_s28   ;;  %s3735_s0 = sand.u32 (!%p436_p4), 1, %s2705_s26  }
  0x59   : > { %439 = sbr.rel (%p436_p4) target bundleno = 1090 (0x442), region = 90  ;;  %s2936_s20 = sshll.u32 (!%p436_p4), %s442_s19, 4 }
  0x5a   : > { %s2940_s11 = sshll.u32 (!%p436_p4), %s3735_s0, 3  ;;  %s505_s9 = sld [smem:[#allocation6 + %s2725_s12]] (!%p436_p4) }
  0x5b   : > { %p527_p5 = scmp.lt.s32.totalorder (!%p436_p4), %s2725_s12, 1  ;;  %s509_s18 = sld [smem:[#allocation5 + %s2725_s12]] (!%p436_p4) }
  0x5c   : > { %s3760_s21 = sld [smem:[#allocation18_spill]] (!%p436_p4)  ;;  %s496_s14 = scalar_lea.vmem (!%p436_p4), [#allocation8], %s2940_s11 }
  0x5d   : > { %p2283_p11 = scmp.ne.s32.totalorder (!%p436_p4), %s2721_s30, 0 }
  0x60   : > { %s2945_s6 = scalar_select %p527_p5, %s2725_s12, 1 }
  0x61   : > { %s2279_s28 = sadd.s32 4294967295, %s505_s9  ;;  %s444_s9 = scalar_lea.vmem [#allocation7], %s2936_s20  ;;  %v2741_v2 = vmov (!%p2283_p11), 0.0   ;;  %v2742_v3 = vmov (!%p2283_p11), -3.4028235e+38  }
  0x62   : > { %s2282_s3 = sshll.u32 %s2945_s6, 3  ;;  %p507_p7 = scmp.gt.s32.totalorder %s2279_s28, 0  ;;  %538 = vst [vmem:[#allocation2] sm:$0xff] (!%p2283_p11), %v2741_v2  ;;  %539 = vst [vmem:[#allocation2 + $0x8] sm:$0x1] (!%p2283_p11), %v2741_v2 }
  0x63   : > { %s2955_s23 = scalar_lea.vmem %s3719_s4, %s2282_s3  ;;  %540 = vst [vmem:[#allocation3] sm:$0xff] (!%p2283_p11), %v2742_v3 }
  0x64   : > { %s3829_s28 = smov (!%p507_p7, %s2279_s28), 0 }
  0x65   : > { %p510_p8 = scmp.lt.s32.totalorder %s2721_s30, %s3829_s28 }
  0x67   : > { %s511_s19 = scalar_select %p510_p8, %s2721_s30, %s3829_s28 }
  0x69   : > { %s512_s0 = sadd.s32 %s511_s19, %s509_s18  ;;  %537 = sbr.rel (%p2283_p11) target bundleno = 112 (0x70), region = 98 }
  0x6a   : > { %s2280_s2 = sshll.u32 %s512_s0, 4 }
  0x6b   : > { %p514_p9 = scmp.lt.s32.totalorder %s2280_s2, 47 }
  0x6d   : > { %s3831_s2 = smov (!%p514_p9, %s2280_s2), 47 }
  0x6e   : > { %s2281_s17 = sshll.u32 %s3831_s2, 3 }
  0x6f   : > { %s2963_s22 = scalar_lea.vmem %s3760_s21, %s2281_s17 }
  0x70 PF: > { %s541_s0 = sld [smem:[#allocation6 + %s2725_s12]] }
  0x76   : > { %p2284_p12 = scmp.ge.s32.totalorder %s2721_s30, %s541_s0 }
  0x77   : > { %v2971_v4 = vld [vmem:[%s2963_s22 + $0x10] sm:$0xff] (!%p2284_p12)  ;;  %v2974_v5 = vld [vmem:[%s2963_s22] sm:$0xff] (!%p2284_p12)  ;;  %v2743_v6 = vmov (!%p2284_p12), 8   ;;  %v2979_v7 = vld [vmem:[%s2963_s22 + $0x18] sm:$0xff] (!%p2284_p12)  ;;  %v2744_v21 = vmov (!%p2284_p12), 0   ;;  %v2745_v22 = vmov (!%p2284_p12), 1   ;;  %v546_v24 = vlaneseq (!%p2284_p12) }
  0x78   : > { %545 = sbr.rel (%p2284_p12) target bundleno = 591 (0x24f), region = 102  ;;  %2576 = vset.pattern.permute.xlu1 (!%p2284_p12), %v2743_v6  ;;  %2575 = vset.pattern.permute.xlu0 (!%p2284_p12), %v2743_v6  ;;  %v2982_v8 = vld [vmem:[%s2963_s22 + $0x8] sm:$0xff] (!%p2284_p12)  ;;  %v2990_v10 = vld [vmem:[%s2963_s22 + $0x20] sm:$0xff] (!%p2284_p12)  ;;  %v2995_v11 = vld [vmem:[%s2963_s22 + $0x38] sm:$0xff] (!%p2284_p12)  ;;  %v2746_v23 = vmov (!%p2284_p12), 2   ;;  %s2285_s2 = sshll.u32 (!%p2284_p12), %s2725_s12, 7 }
  0x79   : > { %580 = vperm.xlu1 (!%p2284_p12), %2576, %v2971_v4   ;;  %570 = vperm.xlu0 (!%p2284_p12), %2575, %v2974_v5   ;;  %v2987_v9 = vld [vmem:[%s2963_s22 + $0x28] sm:$0xff] (!%p2284_p12)  ;;  %v2998_v12 = vld [vmem:[%s2963_s22 + $0x30] sm:$0xff] (!%p2284_p12)  ;;  %v3006_v14 = vld [vmem:[%s2963_s22 + $0x40] sm:$0xff] (!%p2284_p12)  ;;  %v547_v25 = vand.u32 (!%p2284_p12), 127, %v546_v24  ;;  %v549_v26 = vstv (!%p2284_p12), %s2285_s2  ;;  %v2747_v30 = vmov (!%p2284_p12), 3   ;;  %v3781_v54 = vmov (!%p2284_p12), 0 }
  0x7a   : > { %v3003_v13 = vld [vmem:[%s2963_s22 + $0x48] sm:$0xff] (!%p2284_p12)  ;;  %v3011_v15 = vld [vmem:[%s2963_s22 + $0x58] sm:$0xff] (!%p2284_p12)  ;;  %v3014_v16 = vld [vmem:[%s2963_s22 + $0x50] sm:$0xff] (!%p2284_p12)  ;;  %v2748_v38 = vmov (!%p2284_p12), 1.0|1.0   ;;  %v3783_v55 = vmov (!%p2284_p12), 0 }
  0x7b   : > { %v3019_v17 = vld [vmem:[%s2963_s22 + $0x68] sm:$0xff] (!%p2284_p12)  ;;  %v3022_v18 = vld [vmem:[%s2963_s22 + $0x60] sm:$0xff] (!%p2284_p12)  ;;  %v3027_v19 = vld [vmem:[%s2963_s22 + $0x78] sm:$0xff] (!%p2284_p12)  ;;  %v550_v27 = vadd.s32 (!%p2284_p12), %v549_v26, %v547_v25  ;;  %v2749_v0 = vmov (!%p2284_p12), 4  }
  0x7c   : > { %v3030_v20 = vld [vmem:[%s2963_s22 + $0x70] sm:$0xff] (!%p2284_p12)  ;;  %v698_v28 = vld [vmem:[%s444_s9] sm:$0xff] (!%p2284_p12) }
  0x7d   : > { %585 = vperm.xlu1 (!%p2284_p12), %2576, %v2979_v7   ;;  %575 = vperm.xlu0 (!%p2284_p12), %2575, %v2982_v8   ;;  %v3084_v32 = vcvt.s32.f32 (!%p2284_p12), %v550_v27  ;;  %v699_v3 = vld [vmem:[%s444_s9 + $0x8] sm:$0x1] (!%p2284_p12) }
  0x7e   : > { %2393 = vmatprep.mubr.f32.mxu0 (!%p2284_p12), %v698_v28 }
  0x81   : > { %595 = vperm.xlu1 %2576, %v2987_v9   ;;  %590 = vperm.xlu0 %2575, %v2990_v10  }
  0x85   : > { %605 = vperm.xlu1 %2576, %v2995_v11   ;;  %600 = vperm.xlu0 %2575, %v2998_v12  }
  0x89   : > { %615 = vperm.xlu1 %2576, %v3003_v13   ;;  %610 = vperm.xlu0 %2575, %v3006_v14  }
  0x8d   : > { %625 = vperm.xlu1 %2576, %v3011_v15   ;;  %620 = vperm.xlu0 %2575, %v3014_v16  }
  0x91   : > { %635 = vperm.xlu1 %2576, %v3019_v17   ;;  %630 = vperm.xlu0 %2575, %v3022_v18  }
  0x95   : > { %645 = vperm.xlu1 %2576, %v3027_v19   ;;  %640 = vperm.xlu0 %2575, %v3030_v20  }
  0x99   : > { %2578 = vset.pattern.permute.xlu1 %v2744_v21  ;;  %2577 = vset.pattern.permute.xlu0 %v2744_v21 }
  0x9a   : > { %802 = vperm.xlu1 %2578, %v2982_v8   ;;  %797 = vperm.xlu0 %2577, %v2974_v5  }
  0x9e   : > { %807 = vperm.xlu1 %2578, %v2971_v4   ;;  %812 = vperm.xlu0 %2577, %v2979_v7  }
  0xa2   : > { %817 = vperm.xlu1 %2578, %v2990_v10   ;;  %822 = vperm.xlu0 %2577, %v2987_v9  }
  0xa6   : > { %827 = vperm.xlu1 %2578, %v2998_v12   ;;  %832 = vperm.xlu0 %2577, %v2995_v11  }
  0xaa   : > { %837 = vperm.xlu1 %2578, %v3006_v14   ;;  %842 = vperm.xlu0 %2577, %v3003_v13  }
  0xae   : > { %847 = vperm.xlu1 %2578, %v3014_v16   ;;  %852 = vperm.xlu0 %2577, %v3011_v15  }
  0xb2   : > { %857 = vperm.xlu1 %2578, %v3022_v18   ;;  %862 = vperm.xlu0 %2577, %v3019_v17  }
  0xb6   : > { %867 = vperm.xlu1 %2578, %v3030_v20   ;;  %872 = vperm.xlu0 %2577, %v3027_v19  }
  0xba   : > { %2579 = vset.pattern.permute.xlu1 %v2745_v22  ;;  %2580 = vset.pattern.permute.xlu0 %v2745_v22 }
  0xbb   : > { %933 = vperm.xlu1 %2579, %v2974_v5   ;;  %938 = vperm.xlu0 %2580, %v2982_v8  }
  0xbf   : > { %943 = vperm.xlu1 %2579, %v2971_v4   ;;  %953 = vperm.xlu0 %2580, %v2990_v10  }
  0xc3   : > { %948 = vperm.xlu1 %2579, %v2979_v7   ;;  %963 = vperm.xlu0 %2580, %v2998_v12  }
  0xc7   : > { %958 = vperm.xlu1 %2579, %v2987_v9   ;;  %973 = vperm.xlu0 %2580, %v3006_v14  }
  0xcb   : > { %968 = vperm.xlu1 %2579, %v2995_v11   ;;  %983 = vperm.xlu0 %2580, %v3014_v16  }
  0xcf   : > { %978 = vperm.xlu1 %2579, %v3003_v13   ;;  %993 = vperm.xlu0 %2580, %v3022_v18  }
  0xd3   : > { %988 = vperm.xlu1 %2579, %v3011_v15   ;;  %1003 = vperm.xlu0 %2580, %v3030_v20  }
  0xd7   : > { %998 = vperm.xlu1 %2579, %v3019_v17   ;;  %2581 = vset.pattern.permute.xlu0 %v2746_v23 }
  0xd8   : > { %1069 = vperm.xlu0 %2581, %v2974_v5  }
  0xdb   : > { %1008 = vperm.xlu1 %2579, %v3027_v19  }
  0xdc   : > { %1084 = vperm.xlu0 %2581, %v2979_v7  }
  0xdf   : > { %2582 = vset.pattern.permute.xlu1 %v2746_v23 }
  0xe0   : > { %1074 = vperm.xlu1 %2582, %v2982_v8   ;;  %1094 = vperm.xlu0 %2581, %v2987_v9  }
  0xe4   : > { %1079 = vperm.xlu1 %2582, %v2971_v4   ;;  %1104 = vperm.xlu0 %2581, %v2995_v11  }
  0xe8   : > { %1089 = vperm.xlu1 %2582, %v2990_v10   ;;  %1114 = vperm.xlu0 %2581, %v3003_v13  }
  0xec   : > { %1099 = vperm.xlu1 %2582, %v2998_v12   ;;  %1124 = vperm.xlu0 %2581, %v3011_v15  }
  0xf0   : > { %1109 = vperm.xlu1 %2582, %v3006_v14   ;;  %1134 = vperm.xlu0 %2581, %v3019_v17  }
  0xf4   : > { %1119 = vperm.xlu1 %2582, %v3014_v16   ;;  %1144 = vperm.xlu0 %2581, %v3027_v19  }
  0xf8   : > { %1129 = vperm.xlu1 %2582, %v3022_v18   ;;  %v581_v29 = vpop.permute.xlu1 %580  ;;  %2584 = vset.pattern.permute.xlu0 %v2747_v30  ;;  %v571_v31 = vpop.permute.xlu0 %570 }
  0xf9   : > { %1210 = vperm.xlu0 %2584, %v2982_v8   ;;  %vm3088_vm0 = vcmp.eq.f32.partialorder %v571_v31, %v3084_v32  ;;  %vm3110_vm4 = vcmp.eq.f32.partialorder %v581_v29, %v3084_v32 }
  0xfc   : > { %1139 = vperm.xlu1 %2582, %v3030_v20   ;;  %v586_v34 = vpop.permute.xlu1 %585  ;;  %v576_v35 = vpop.permute.xlu0 %575 }
  0xfd   : > { %vm3094_vm1 = vcmp.eq.f32.partialorder %v576_v35, %v3084_v32  ;;  %1225 = vperm.xlu0 %2584, %v2990_v10   ;;  %vm3100_vm2 = vcmp.eq.f32.partialorder %v586_v34, %v3084_v32 }
  0xfe   : > { %vm2421_vm3 = vmpackc.low %vm3094_vm1, %vm3088_vm0 }
  0xff   : > { %2422 = vmatprep.subr.msk.bf16.mxu0 %vm2421_vm3, %v2748_v38  ;;  %vm2425_vm5 = vmpackc.low %vm3100_vm2, %vm3110_vm4 }
 0x100   : > { %2583 = vset.pattern.permute.xlu1 %v2747_v30  ;;  %v596_v40 = vpop.permute.xlu1 %595  ;;  %v591_v41 = vpop.permute.xlu0 %590  ;;  %2424 = vmatpush3.bf16.msk.msra.mxu0 %vm2421_vm3, %v2748_v38 }
 0x101   : > { %1205 = vperm.xlu1 %2583, %v2974_v5   ;;  %1235 = vperm.xlu0 %2584, %v2998_v12   ;;  %vm3122_vm6 = vcmp.eq.f32.partialorder %v596_v40, %v3084_v32  ;;  %vm3127_vm7 = vcmp.eq.f32.partialorder %v591_v41, %v3084_v32 }
 0x102   : > { %2426 = vmatprep.subr.msk.bf16.mxu0 %vm2425_vm5, %v2748_v38  ;;  %vm2429_vm8 = vmpackc.low %vm3122_vm6, %vm3127_vm7 }
 0x104   : > { %v606_v44 = vpop.permute.xlu1 %605  ;;  %v601_v45 = vpop.permute.xlu0 %600  ;;  %2428 = vmatpush3.bf16.msk.msra.mxu0 %vm2425_vm5, %v2748_v38 }
 0x105   : > { %1215 = vperm.xlu1 %2583, %v2971_v4   ;;  %1245 = vperm.xlu0 %2584, %v3006_v14   ;;  %vm3140_vm9 = vcmp.eq.f32.partialorder %v606_v44, %v3084_v32  ;;  %vm3145_vm10 = vcmp.eq.f32.partialorder %v601_v45, %v3084_v32 }
 0x106   : > { %2430 = vmatprep.subr.msk.bf16.mxu0 %vm2429_vm8, %v2748_v38  ;;  %vm2433_vm11 = vmpackc.low %vm3140_vm9, %vm3145_vm10 }
 0x108   : > { %v616_v48 = vpop.permute.xlu1 %615  ;;  %v611_v49 = vpop.permute.xlu0 %610  ;;  %2432 = vmatpush3.bf16.msk.msra.mxu0 %vm2429_vm8, %v2748_v38 }
 0x109   : > { %1220 = vperm.xlu1 %2583, %v2979_v7   ;;  %1255 = vperm.xlu0 %2584, %v3014_v16   ;;  %vm3158_vm12 = vcmp.eq.f32.partialorder %v616_v48, %v3084_v32  ;;  %vm3163_vm13 = vcmp.eq.f32.partialorder %v611_v49, %v3084_v32 }
 0x10a   : > { %2434 = vmatprep.subr.msk.bf16.mxu0 %vm2433_vm11, %v2748_v38  ;;  %vm2437_vm14 = vmpackc.low %vm3158_vm12, %vm3163_vm13 }
 0x10c   : > { %v626_v52 = vpop.permute.xlu1 %625  ;;  %v621_v53 = vpop.permute.xlu0 %620  ;;  %2436 = vmatpush3.bf16.msk.msra.mxu0 %vm2433_vm11, %v2748_v38 }
 0x10d   : > { %1230 = vperm.xlu1 %2583, %v2987_v9   ;;  %1265 = vperm.xlu0 %2584, %v3022_v18   ;;  %vm3176_vm15 = vcmp.eq.f32.partialorder %v626_v52, %v3084_v32  ;;  %vm3181_vm3 = vcmp.eq.f32.partialorder %v621_v53, %v3084_v32 }
 0x10e   : > { %v3782_v54 = vsel %vm3176_vm15, 4294967295, %v3781_v54  ;;  %v3784_v55 = vsel %vm3181_vm3, 4294967295, %v3783_v55  ;;  %2438 = vmatprep.subr.msk.bf16.mxu0 %vm2437_vm14, %v2748_v38  ;;  %vm2441_vm5 = vmpackc.low %vm3176_vm15, %vm3181_vm3 }
 0x110   : > { %v636_v56 = vpop.permute.xlu1 %635  ;;  %v631_v57 = vpop.permute.xlu0 %630  ;;  %2440 = vmatpush3.bf16.msk.msra.mxu0 %vm2437_vm14, %v2748_v38 }
 0x111   : > { %1240 = vperm.xlu1 %2583, %v2995_v11   ;;  %1275 = vperm.xlu0 %2584, %v3030_v20   ;;  %vm3194_vm8 = vcmp.eq.f32.partialorder %v636_v56, %v3084_v32  ;;  %vm3199_vm11 = vcmp.eq.f32.partialorder %v631_v57, %v3084_v32 }
 0x112   : > { %2442 = vmatprep.subr.msk.bf16.mxu0 %vm2441_vm5, %v2748_v38 }
 0x114   : > { %v646_v60 = vpop.permute.xlu1 %645  ;;  %v641_v61 = vpop.permute.xlu0 %640  ;;  %2444 = vmatpush3.bf16.msk.msra.mxu0 %vm2441_vm5, %v2748_v38  ;;  %vm2445_vm5 = vmpackc.low %vm3194_vm8, %vm3199_vm11 }
 0x115   : > { %vm3206_vm14 = vcmp.eq.f32.partialorder %v646_v60, %v3084_v32  ;;  %vm3211_vm15 = vcmp.eq.f32.partialorder %v641_v61, %v3084_v32  ;;  %1250 = vperm.xlu1 %2583, %v3003_v13   ;;  %2585 = vset.pattern.permute.xlu0 %v2749_v0 }
 0x116   : > { %2446 = vmatprep.subr.msk.bf16.mxu0 %vm2445_vm5, %v2748_v38  ;;  %1341 = vperm.xlu0 %2585, %v2974_v5   ;;  %vm2449_vm3 = vmpackc.low %vm3206_vm14, %vm3211_vm15 }
 0x118   : > { %2448 = vmatpush3.bf16.msk.msra.mxu0 %vm2445_vm5, %v2748_v38  ;;  %vm3794_vm5 = vnez %v3782_v54 }
 0x119   : > { %1260 = vperm.xlu1 %2583, %v3011_v15   ;;  %v803_v1 = vpop.permute.xlu1 %802  ;;  %v798_v2 = vpop.permute.xlu0 %797  ;;  %2450 = vmatprep.subr.msk.bf16.mxu0 %vm2449_vm3, %v2748_v38 }
 0x11a   : > { %1356 = vperm.xlu0 %2585, %v2979_v7   ;;  %v875_v30 = vsel %vm3088_vm0, %v798_v2, -3.4028235e+38  ;;  %v876_v34 = vsel %vm3094_vm1, %v803_v1, -3.4028235e+38 }
 0x11c   : > { %2452 = vmatpush3.bf16.msk.msra.mxu0 %vm2449_vm3, %v2748_v38  ;;  %vm3793_vm3 = vnez %v3784_v55 }
 0x11d   : > { %1270 = vperm.xlu1 %2583, %v3019_v17   ;;  %v808_v6 = vpop.permute.xlu1 %807  ;;  %v813_v21 = vpop.permute.xlu0 %812 }
 0x11e   : > { %1366 = vperm.xlu0 %2585, %v2987_v9   ;;  %v877_v35 = vsel %vm3110_vm4, %v808_v6, -3.4028235e+38  ;;  %v878_v45 = vsel %vm3100_vm2, %v813_v21, -3.4028235e+38 }
 0x11f   : > { %2394 = vmatmul.mubr.f32.vlgmr.msra.gmra.mrb[0].mxu0 %v699_v3 }
 0x121   : > { %1280 = vperm.xlu1 %2583, %v3027_v19   ;;  %v818_v22 = vpop.permute.xlu1 %817  ;;  %v823_v23 = vpop.permute.xlu0 %822 }
 0x122   : > { %1376 = vperm.xlu0 %2585, %v2995_v11   ;;  %v879_v31 = vsel %vm3127_vm7, %v818_v22, -3.4028235e+38  ;;  %v880_v32 = vsel %vm3122_vm6, %v823_v23, -3.4028235e+38 }
 0x123   : > { %v891_v48 = vmax.f32 %v875_v30, %v879_v31  ;;  %v892_v49 = vmax.f32 %v876_v34, %v880_v32 }
 0x125   : > { %2586 = vset.pattern.permute.xlu1 %v2749_v0  ;;  %v828_v24 = vpop.permute.xlu1 %827  ;;  %v833_v25 = vpop.permute.xlu0 %832 }
 0x126   : > { %1346 = vperm.xlu1 %2586, %v2982_v8   ;;  %1386 = vperm.xlu0 %2585, %v3003_v13   ;;  %v881_v38 = vsel %vm3145_vm10, %v828_v24, -3.4028235e+38  ;;  %v882_v40 = vsel %vm3140_vm9, %v833_v25, -3.4028235e+38 }
 0x127   : > { %v893_v0 = vmax.f32 %v877_v35, %v881_v38  ;;  %v894_v1 = vmax.f32 %v878_v45, %v882_v40 }
 0x129   : > { %v838_v26 = vpop.permute.xlu1 %837  ;;  %v843_v27 = vpop.permute.xlu0 %842 }
 0x12a   : > { %1351 = vperm.xlu1 %2586, %v2971_v4   ;;  %1396 = vperm.xlu0 %2585, %v3011_v15   ;;  %v883_v41 = vsel %vm3163_vm13, %v838_v26, -3.4028235e+38  ;;  %v884_v44 = vsel %vm3158_vm12, %v843_v27, -3.4028235e+38 }
 0x12b   : > { %v895_v2 = vmax.f32 %v891_v48, %v883_v41  ;;  %v896_v3 = vmax.f32 %v892_v49, %v884_v44 }
 0x12d   : > { %v848_v28 = vpop.permute.xlu1 %847  ;;  %v853_v29 = vpop.permute.xlu0 %852 }
 0x12e   : > { %1361 = vperm.xlu1 %2586, %v2990_v10   ;;  %1406 = vperm.xlu0 %2585, %v3019_v17   ;;  %v885_v52 = vsel %vm3793_vm3, %v848_v28, -3.4028235e+38  ;;  %v886_v57 = vsel %vm3794_vm5, %v853_v29, -3.4028235e+38  ;;  %v2750_v28 = vmov 5  }
 0x12f   : > { %v897_v6 = vmax.f32 %v893_v0, %v885_v52  ;;  %v898_v21 = vmax.f32 %v894_v1, %v886_v57  ;;  %v912_v57 = vld [vmem:[#allocation3] sm:$0x1] }
 0x131   : > { %v858_v53 = vpop.permute.xlu1 %857  ;;  %v863_v56 = vpop.permute.xlu0 %862 }
 0x132   : > { %v887_v60 = vsel %vm3199_vm11, %v858_v53, -3.4028235e+38  ;;  %v888_v61 = vsel %vm3194_vm8, %v863_v56, -3.4028235e+38  ;;  %1371 = vperm.xlu1 %2586, %v2998_v12   ;;  %1416 = vperm.xlu0 %2585, %v3027_v19  }
 0x133   : > { %v899_v22 = vmax.f32 %v895_v2, %v887_v60  ;;  %v900_v23 = vmax.f32 %v896_v3, %v888_v61 }
 0x135   : > { %v868_v24 = vpop.permute.xlu1 %867  ;;  %v873_v25 = vpop.permute.xlu0 %872  ;;  %v903_v31 = vmax.f32 %v899_v22, %v900_v23 }
 0x136   : > { %v889_v26 = vsel %vm3211_vm15, %v868_v24, -3.4028235e+38  ;;  %v890_v27 = vsel %vm3206_vm14, %v873_v25, -3.4028235e+38  ;;  %1381 = vperm.xlu1 %2586, %v3006_v14   ;;  %2588 = vset.pattern.permute.xlu0 %v2750_v28  ;;  %v2751_v25 = vmov 6  }
 0x137   : > { %v901_v29 = vmax.f32 %v897_v6, %v889_v26  ;;  %v902_v30 = vmax.f32 %v898_v21, %v890_v27  ;;  %1482 = vperm.xlu0 %2588, %v2982_v8  }
 0x139   : > { %v904_v32 = vmax.f32 %v901_v29, %v902_v30 }
 0x13a   : > { %1391 = vperm.xlu1 %2586, %v3014_v16   ;;  %v934_v34 = vpop.permute.xlu1 %933  ;;  %v939_v35 = vpop.permute.xlu0 %938 }
 0x13b   : > { %v905_v38 = vmax.f32 %v903_v31, %v904_v32  ;;  %1497 = vperm.xlu0 %2588, %v2990_v10   ;;  %v1011_v26 = vsel %vm3088_vm0, %v934_v34, -3.4028235e+38  ;;  %v1012_v27 = vsel %vm3094_vm1, %v939_v35, -3.4028235e+38 }
 0x13d   : > { %v906_v40 = vrot.slane %v905_v38, 4 }
 0x13e   : > { %1401 = vperm.xlu1 %2586, %v3022_v18   ;;  %v944_v41 = vpop.permute.xlu1 %943  ;;  %v954_v44 = vpop.permute.xlu0 %953 }
 0x13f   : > { %v907_v45 = vmax.f32 %v905_v38, %v906_v40  ;;  %1507 = vperm.xlu0 %2588, %v2998_v12   ;;  %v1013_v31 = vsel %vm3110_vm4, %v944_v41, -3.4028235e+38 }
 0x141   : > { %v908_v48 = vrot.slane %v907_v45, 2 }
 0x142   : > { %1411 = vperm.xlu1 %2586, %v3030_v20   ;;  %v949_v49 = vpop.permute.xlu1 %948  ;;  %v964_v52 = vpop.permute.xlu0 %963 }
 0x143   : > { %v909_v53 = vmax.f32 %v907_v45, %v908_v48  ;;  %1517 = vperm.xlu0 %2588, %v3006_v14   ;;  %v1014_v32 = vsel %vm3100_vm2, %v949_v49, -3.4028235e+38 }
 0x145   : > { %v910_v56 = vrot.slane %v909_v53, 1 }
 0x146   : > { %2587 = vset.pattern.permute.xlu1 %v2750_v28  ;;  %v959_v60 = vpop.permute.xlu1 %958  ;;  %v974_v61 = vpop.permute.xlu0 %973  ;;  %v1015_v28 = vsel %vm3127_vm7, %v954_v44, -3.4028235e+38 }
 0x147   : > { %v911_v0 = vmax.f32 %v909_v53, %v910_v56  ;;  %1477 = vperm.xlu1 %2587, %v2974_v5   ;;  %1527 = vperm.xlu0 %2588, %v3014_v16   ;;  %v1016_v24 = vsel %vm3122_vm6, %v959_v60, -3.4028235e+38  ;;  %v1019_v35 = vsel %vm3163_vm13, %v974_v61, -3.4028235e+38  ;;  %v1027_v45 = vmax.f32 %v1011_v26, %v1015_v28 }
 0x148   : > { %v1028_v34 = vmax.f32 %v1012_v27, %v1016_v24 }
 0x149   : > { %v913_v1 = vmax.f32 %v912_v57, %v911_v0  ;;  %v1031_v57 = vmax.f32 %v1027_v45, %v1019_v35  ;;  %v1048_v35 = vld [vmem:[#allocation3 + $0x1] sm:$0x1] }
 0x14a   : > { %v969_v2 = vpop.permute.xlu1 %968  ;;  %v984_v3 = vpop.permute.xlu0 %983 }
 0x14b   : > { %914 = vst [vmem:[#allocation3] sm:$0x1] %v913_v1  ;;  %1487 = vperm.xlu1 %2587, %v2971_v4   ;;  %1537 = vperm.xlu0 %2588, %v3022_v18   ;;  %v1018_v29 = vsel %vm3140_vm9, %v969_v2, -3.4028235e+38  ;;  %v1021_v38 = vsel %vm3793_vm3, %v984_v3, -3.4028235e+38 }
 0x14c   : > { %v1030_v49 = vmax.f32 %v1014_v32, %v1018_v29 }
 0x14e   : > { %v979_v6 = vpop.permute.xlu1 %978  ;;  %v994_v21 = vpop.permute.xlu0 %993 }
 0x14f   : > { %1492 = vperm.xlu1 %2587, %v2979_v7   ;;  %1547 = vperm.xlu0 %2588, %v3030_v20   ;;  %v1017_v20 = vsel %vm3145_vm10, %v964_v52, -3.4028235e+38  ;;  %v1020_v30 = vsel %vm3158_vm12, %v979_v6, -3.4028235e+38  ;;  %v1023_v53 = vsel %vm3199_vm11, %v994_v21, -3.4028235e+38 }
 0x150   : > { %v1029_v48 = vmax.f32 %v1013_v31, %v1017_v20  ;;  %v1032_v52 = vmax.f32 %v1028_v34, %v1020_v30  ;;  %v1035_v6 = vmax.f32 %v1031_v57, %v1023_v53 }
 0x152   : > { %v989_v22 = vpop.permute.xlu1 %988  ;;  %v1004_v23 = vpop.permute.xlu0 %1003  ;;  %v1033_v60 = vmax.f32 %v1029_v48, %v1021_v38 }
 0x153   : > { %1502 = vperm.xlu1 %2587, %v2987_v9   ;;  %2589 = vset.pattern.permute.xlu0 %v2751_v25  ;;  %v1022_v40 = vsel %vm3794_vm5, %v989_v22, -3.4028235e+38  ;;  %v1025_v56 = vsel %vm3211_vm15, %v1004_v23, -3.4028235e+38 }
 0x154   : > { %1613 = vperm.xlu0 %2589, %v2974_v5   ;;  %v1034_v61 = vmax.f32 %v1030_v49, %v1022_v40 }
 0x156   : > { %v999_v5 = vpop.permute.xlu1 %998 }
 0x157   : > { %v1024_v44 = vsel %vm3194_vm8, %v999_v5, -3.4028235e+38  ;;  %1512 = vperm.xlu1 %2587, %v2995_v11   ;;  %v3321_v41 = vpop.permute.xlu0 %1069 }
 0x158   : > { %1628 = vperm.xlu0 %2589, %v2979_v7   ;;  %v1036_v0 = vmax.f32 %v1032_v52, %v1024_v44  ;;  %v1037_v7 = vmax.f32 %v1033_v60, %v1025_v56  ;;  %v2752_v52 = vmov 7  }
 0x15a   : > { %v1009_v1 = vpop.permute.xlu1 %1008  ;;  %v1039_v21 = vmax.f32 %v1035_v6, %v1036_v0 }
 0x15b   : > { %v1026_v2 = vsel %vm3206_vm14, %v1009_v1, -3.4028235e+38  ;;  %1522 = vperm.xlu1 %2587, %v3003_v13   ;;  %v3331_v3 = vpop.permute.xlu0 %1084 }
 0x15c   : > { %v1038_v22 = vmax.f32 %v1034_v61, %v1026_v2  ;;  %1638 = vperm.xlu0 %2589, %v2987_v9  }
 0x15e   : > { %v1040_v24 = vmax.f32 %v1037_v7, %v1038_v22 }
 0x15f   : > { %1532 = vperm.xlu1 %2587, %v3011_v15   ;;  %v1075_v23 = vpop.permute.xlu1 %1074  ;;  %v1095_v26 = vpop.permute.xlu0 %1094 }
 0x160   : > { %v1041_v27 = vmax.f32 %v1039_v21, %v1040_v24  ;;  %1648 = vperm.xlu0 %2589, %v2995_v11   ;;  %v1148_v53 = vsel %vm3094_vm1, %v1075_v23, -3.4028235e+38 }
 0x162   : > { %v1042_v28 = vrot.slane %v1041_v27, 4 }
 0x163   : > { %1542 = vperm.xlu1 %2587, %v3019_v17   ;;  %v1080_v20 = vpop.permute.xlu1 %1079  ;;  %v1105_v29 = vpop.permute.xlu0 %1104 }
 0x164   : > { %v1043_v30 = vmax.f32 %v1041_v27, %v1042_v28  ;;  %1658 = vperm.xlu0 %2589, %v3003_v13   ;;  %v1149_v60 = vsel %vm3110_vm4, %v1080_v20, -3.4028235e+38 }
 0x166   : > { %v1044_v31 = vrot.slane %v1043_v30, 2 }
 0x167   : > { %1552 = vperm.xlu1 %2587, %v3027_v19   ;;  %v1090_v9 = vpop.permute.xlu1 %1089  ;;  %v1115_v32 = vpop.permute.xlu0 %1114 }
 0x168   : > { %v1045_v34 = vmax.f32 %v1043_v30, %v1044_v31  ;;  %1663 = vperm.xlu0 %2589, %v3014_v16   ;;  %v1151_v49 = vsel %vm3127_vm7, %v1090_v9, -3.4028235e+38 }
 0x16a   : > { %v1046_v15 = vrot.slane %v1045_v34, 1 }
 0x16b   : > { %2590 = vset.pattern.permute.xlu1 %v2751_v25  ;;  %v1100_v11 = vpop.permute.xlu1 %1099  ;;  %v1125_v5 = vpop.permute.xlu0 %1124 }
 0x16c   : > { %v1047_v38 = vmax.f32 %v1045_v34, %v1046_v15  ;;  %1618 = vperm.xlu1 %2590, %v2982_v8   ;;  %1673 = vperm.xlu0 %2589, %v3022_v18   ;;  %v1147_v18 = vsel %vm3088_vm0, %v3321_v41, -3.4028235e+38  ;;  %v1153_v56 = vsel %vm3145_vm10, %v1100_v11, -3.4028235e+38  ;;  %v1150_v41 = vsel %vm3100_vm2, %v3331_v3, -3.4028235e+38 }
 0x16d   : > { %v1163_v61 = vmax.f32 %v1147_v18, %v1151_v49  ;;  %v1158_v1 = vsel %vm3794_vm5, %v1125_v5, -3.4028235e+38  ;;  %v1165_v21 = vmax.f32 %v1149_v60, %v1153_v56  ;;  %v1731_v15 = vld [vmem:[%s2963_s22] sm:$0xff] }
 0x16e   : > { %v1049_v40 = vmax.f32 %v1048_v35, %v1047_v38 }
 0x16f   : > { %v1110_v44 = vpop.permute.xlu1 %1109  ;;  %v1135_v45 = vpop.permute.xlu0 %1134 }
 0x170   : > { %1050 = vst [vmem:[#allocation3 + $0x1] sm:$0x1] %v1049_v40  ;;  %1623 = vperm.xlu1 %2590, %v2971_v4   ;;  %1688 = vperm.xlu0 %2589, %v3027_v19   ;;  %v1152_v4 = vsel %vm3122_vm6, %v1095_v26, -3.4028235e+38  ;;  %v1154_v19 = vsel %vm3140_vm9, %v1105_v29, -3.4028235e+38 }
 0x171   : > { %v1155_v57 = vsel %vm3163_vm13, %v1110_v44, -3.4028235e+38  ;;  %v1164_v7 = vmax.f32 %v1148_v53, %v1152_v4  ;;  %v1166_v22 = vmax.f32 %v1150_v41, %v1154_v19  ;;  %v1160_v23 = vsel %vm3194_vm8, %v1135_v45, -3.4028235e+38  ;;  %v1736_v19 = vld [vmem:[%s2963_s22 + $0x28] sm:$0xff] }
 0x172   : > { %v1167_v24 = vmax.f32 %v1163_v61, %v1155_v57  ;;  %v1184_v57 = vld [vmem:[#allocation3 + $0x2] sm:$0x1]  ;;  %v1738_v61 = vld [vmem:[%s2963_s22 + $0x38] sm:$0xff] }
 0x173   : > { %v1120_v16 = vpop.permute.xlu1 %1119  ;;  %v1145_v48 = vpop.permute.xlu0 %1144  ;;  %v1170_v28 = vmax.f32 %v1166_v22, %v1158_v1  ;;  %v1739_v22 = vld [vmem:[%s2963_s22 + $0x40] sm:$0xff] }
 0x174   : > { %1633 = vperm.xlu1 %2590, %v2990_v10   ;;  %2595 = vset.pattern.permute.xlu0 %v2752_v52  ;;  %v1157_v2 = vsel %vm3793_vm3, %v1120_v16, -3.4028235e+38  ;;  %v1162_v26 = vsel %vm3206_vm14, %v1145_v48, -3.4028235e+38 }
 0x175   : > { %1754 = vperm.xlu0 %2595, %v2982_v8   ;;  %v1156_v8 = vsel %vm3158_vm12, %v1115_v32, -3.4028235e+38  ;;  %v1169_v20 = vmax.f32 %v1165_v21, %v1157_v2  ;;  %v1174_v32 = vmax.f32 %v1170_v28, %v1162_v26  ;;  %v1741_v28 = vld [vmem:[%s2963_s22 + $0x50] sm:$0xff] }
 0x176   : > { %v1168_v27 = vmax.f32 %v1164_v7, %v1156_v8 }
 0x177   : > { %v1130_v0 = vpop.permute.xlu1 %1129 }
 0x178   : > { %v1159_v6 = vsel %vm3199_vm11, %v1130_v0, -3.4028235e+38  ;;  %1643 = vperm.xlu1 %2590, %v2998_v12   ;;  %v3377_v3 = vpop.permute.xlu0 %1210 }
 0x179   : > { %1769 = vperm.xlu0 %2595, %v2990_v10   ;;  %v1171_v29 = vmax.f32 %v1167_v24, %v1159_v6  ;;  %v1172_v10 = vmax.f32 %v1168_v27, %v1160_v23  ;;  %v1284_v23 = vsel %vm3094_vm1, %v3377_v3, -3.4028235e+38 }
 0x17b   : > { %v1140_v30 = vpop.permute.xlu1 %1139  ;;  %v1175_v35 = vmax.f32 %v1171_v29, %v1172_v10 }
 0x17c   : > { %v1161_v31 = vsel %vm3211_vm15, %v1140_v30, -3.4028235e+38  ;;  %1653 = vperm.xlu1 %2590, %v3006_v14   ;;  %v3387_v9 = vpop.permute.xlu0 %1225  ;;  %v1733_v14 = vld [vmem:[%s2963_s22 + $0x10] sm:$0xff] }
 0x17d   : > { %v1173_v34 = vmax.f32 %v1169_v20, %v1161_v31  ;;  %1779 = vperm.xlu0 %2595, %v2998_v12   ;;  %v1734_v12 = vld [vmem:[%s2963_s22 + $0x18] sm:$0xff]  ;;  %v1287_v26 = vsel %vm3127_vm7, %v3387_v9, -3.4028235e+38 }
 0x17f   : > { %v1176_v11 = vmax.f32 %v1173_v34, %v1174_v32 }
 0x180   : > { %2591 = vset.pattern.permute.xlu1 %v2752_v52  ;;  %v1206_v5 = vpop.permute.xlu1 %1205  ;;  %v1236_v38 = vpop.permute.xlu0 %1235 }
 0x181   : > { %v1177_v40 = vmax.f32 %v1175_v35, %v1176_v11  ;;  %1749 = vperm.xlu1 %2591, %v1731_v15   ;;  %1794 = vperm.xlu0 %2595, %v3003_v13   ;;  %v1283_v27 = vsel %vm3088_vm0, %v1206_v5, -3.4028235e+38  ;;  %v1289_v3 = vsel %vm3145_vm10, %v1236_v38, -3.4028235e+38 }
 0x182   : > { %v1299_v5 = vmax.f32 %v1283_v27, %v1287_v26  ;;  %v1743_v27 = vld [vmem:[%s2963_s22 + $0x60] sm:$0xff] }
 0x183   : > { %v1178_v44 = vrot.slane %v1177_v40, 4 }
 0x184   : > { %v1216_v45 = vpop.permute.xlu1 %1215  ;;  %v1246_v16 = vpop.permute.xlu0 %1245 }
 0x185   : > { %v1179_v48 = vmax.f32 %v1177_v40, %v1178_v44  ;;  %1759 = vperm.xlu1 %2591, %v1733_v14   ;;  %1814 = vperm.xlu0 %2595, %v3019_v17   ;;  %v1606_v17 = vld [vmem:[%s2963_s22 + $0x58] sm:$0xff]  ;;  %v1285_v20 = vsel %vm3110_vm4, %v1216_v45, -3.4028235e+38  ;;  %v1291_v31 = vsel %vm3163_vm13, %v1246_v16, -3.4028235e+38 }
 0x186   : > { %v1301_v38 = vmax.f32 %v1285_v20, %v1289_v3  ;;  %v1303_v16 = vmax.f32 %v1299_v5, %v1291_v31  ;;  %v1320_v20 = vld [vmem:[#allocation3 + $0x3] sm:$0x1] }
 0x187   : > { %v1180_v49 = vrot.slane %v1179_v48, 2 }
 0x188   : > { %v1221_v18 = vpop.permute.xlu1 %1220  ;;  %v1256_v53 = vpop.permute.xlu0 %1255 }
 0x189   : > { %v1181_v4 = vmax.f32 %v1179_v48, %v1180_v49  ;;  %1764 = vperm.xlu1 %2591, %v1734_v12   ;;  %v1286_v9 = vsel %vm3100_vm2, %v1221_v18, -3.4028235e+38  ;;  %v1293_v34 = vsel %vm3793_vm3, %v1256_v53, -3.4028235e+38 }
 0x18a   : > { %v1305_v48 = vmax.f32 %v1301_v38, %v1293_v34 }
 0x18b   : > { %v1182_v56 = vrot.slane %v1181_v4, 1 }
 0x18c   : > { %v1231_v13 = vpop.permute.xlu1 %1230  ;;  %v1266_v41 = vpop.permute.xlu0 %1265 }
 0x18d   : > { %v1183_v60 = vmax.f32 %v1181_v4, %v1182_v56  ;;  %1774 = vperm.xlu1 %2591, %v1736_v19   ;;  %v1288_v21 = vsel %vm3122_vm6, %v1231_v13, -3.4028235e+38  ;;  %v1295_v44 = vsel %vm3199_vm11, %v1266_v41, -3.4028235e+38 }
 0x18e   : > { %v1300_v10 = vmax.f32 %v1284_v23, %v1288_v21  ;;  %v1307_v19 = vmax.f32 %v1303_v16, %v1295_v44 }
 0x18f   : > { %v1185_v8 = vmax.f32 %v1184_v57, %v1183_v60 }
 0x190   : > { %v1241_v0 = vpop.permute.xlu1 %1240  ;;  %v1276_v1 = vpop.permute.xlu0 %1275 }
 0x191   : > { %1186 = vst [vmem:[#allocation3 + $0x2] sm:$0x1] %v1185_v8  ;;  %1784 = vperm.xlu1 %2591, %v1738_v61   ;;  %v1290_v29 = vsel %vm3140_vm9, %v1241_v0, -3.4028235e+38  ;;  %v1297_v45 = vsel %vm3211_vm15, %v1276_v1, -3.4028235e+38 }
 0x192   : > { %v1302_v40 = vmax.f32 %v1286_v9, %v1290_v29  ;;  %v1309_v56 = vmax.f32 %v1305_v48, %v1297_v45  ;;  %v1608_v61 = vld [vmem:[%s2963_s22 + $0x68] sm:$0xff]  ;;  %v1746_v9 = vld [vmem:[%s2963_s22 + $0x78] sm:$0xff] }
 0x194   : > { %v1251_v2 = vpop.permute.xlu1 %1250 }
 0x195   : > { %2592 = vset.pattern.permute.xlu1 %v2751_v25  ;;  %v3400_v6 = vpop.permute.xlu0 %1341  ;;  %v1292_v30 = vsel %vm3158_vm12, %v1251_v2, -3.4028235e+38 }
 0x196   : > { %1668 = vperm.xlu1 %2592, %v1606_v17   ;;  %v1304_v14 = vmax.f32 %v1300_v10, %v1292_v30 }
 0x198   : > { %v1261_v7 = vpop.permute.xlu1 %1260 }
 0x199   : > { %v3405_v24 = vpop.permute.xlu0 %1356  ;;  %v1294_v15 = vsel %vm3794_vm5, %v1261_v7, -3.4028235e+38  ;;  %v1609_v7 = vld [vmem:[%s2963_s22 + $0x70] sm:$0xff] }
 0x19a   : > { %2593 = vset.pattern.permute.xlu1 %v2752_v52  ;;  %v1306_v12 = vmax.f32 %v1302_v40, %v1294_v15 }
 0x19b   : > { %1789 = vperm.xlu1 %2593, %v1739_v22  }
 0x19c   : > { %v1271_v32 = vpop.permute.xlu1 %1270 }
 0x19d   : > { %v1296_v35 = vsel %vm3194_vm8, %v1271_v32, -3.4028235e+38  ;;  %v1367_v11 = vpop.permute.xlu0 %1366 }
 0x19e   : > { %v1308_v49 = vmax.f32 %v1304_v14, %v1296_v35  ;;  %v1424_v35 = vsel %vm3122_vm6, %v1367_v11, -3.4028235e+38  ;;  %v1422_v14 = vsel %vm3100_vm2, %v3405_v24, -3.4028235e+38 }
 0x19f   : > { %1799 = vperm.xlu1 %2593, %v1741_v28  }
 0x1a0   : > { %v1281_v18 = vpop.permute.xlu1 %1280  ;;  %v1311_v13 = vmax.f32 %v1307_v19, %v1308_v49 }
 0x1a1   : > { %v1298_v53 = vsel %vm3206_vm14, %v1281_v18, -3.4028235e+38  ;;  %v1377_v4 = vpop.permute.xlu0 %1376 }
 0x1a2   : > { %v1310_v57 = vmax.f32 %v1306_v12, %v1298_v53  ;;  %v1426_v5 = vsel %vm3140_vm9, %v1377_v4, -3.4028235e+38 }
 0x1a3   : > { %1804 = vperm.xlu1 %2593, %v1606_v17   ;;  %v1438_v18 = vmax.f32 %v1422_v14, %v1426_v5 }
 0x1a4   : > { %v1312_v41 = vmax.f32 %v1309_v56, %v1310_v57 }
 0x1a5   : > { %v1347_v60 = vpop.permute.xlu1 %1346  ;;  %v1387_v0 = vpop.permute.xlu0 %1386 }
 0x1a6   : > { %v1313_v8 = vmax.f32 %v1311_v13, %v1312_v41  ;;  %v1420_v34 = vsel %vm3094_vm1, %v1347_v60, -3.4028235e+38  ;;  %v1428_v24 = vsel %vm3158_vm12, %v1387_v0, -3.4028235e+38 }
 0x1a7   : > { %2594 = vset.pattern.permute.xlu1 %v2751_v25  ;;  %v1436_v44 = vmax.f32 %v1420_v34, %v1424_v35 }
 0x1a8   : > { %v1314_v1 = vrot.slane %v1313_v8, 4  ;;  %1678 = vperm.xlu1 %2594, %v1608_v61  }
 0x1a9   : > { %v1352_v2 = vpop.permute.xlu1 %1351  ;;  %v1397_v23 = vpop.permute.xlu0 %1396  ;;  %v1440_v57 = vmax.f32 %v1436_v44, %v1428_v24 }
 0x1aa   : > { %v1315_v22 = vmax.f32 %v1313_v8, %v1314_v1  ;;  %v1430_v11 = vsel %vm3794_vm5, %v1397_v23, -3.4028235e+38 }
 0x1ab   : > { %v1442_v13 = vmax.f32 %v1438_v18, %v1430_v11 }
 0x1ac   : > { %v1316_v21 = vrot.slane %v1315_v22, 2  ;;  %1683 = vperm.xlu1 %2594, %v1609_v7  }
 0x1ad   : > { %v1362_v26 = vpop.permute.xlu1 %1361  ;;  %v1407_v25 = vpop.permute.xlu0 %1406 }
 0x1ae   : > { %v1317_v17 = vmax.f32 %v1315_v22, %v1316_v21  ;;  %v1423_v15 = vsel %vm3127_vm7, %v1362_v26, -3.4028235e+38  ;;  %v1432_v19 = vsel %vm3194_vm8, %v1407_v25, -3.4028235e+38 }
 0x1af   : > { %v1444_v1 = vmax.f32 %v1440_v57, %v1432_v19 }
 0x1b0   : > { %v1318_v28 = vrot.slane %v1317_v17, 1  ;;  %2596 = vset.pattern.permute.xlu1 %v2752_v52  ;;  %v1419_v52 = vsel %vm3088_vm0, %v3400_v6, -3.4028235e+38  ;;  %v1421_v6 = vsel %vm3110_vm4, %v1352_v2, -3.4028235e+38 }
 0x1b1   : > { %1809 = vperm.xlu1 %2596, %v1743_v27   ;;  %v1372_v29 = vpop.permute.xlu1 %1371  ;;  %v1417_v10 = vpop.permute.xlu0 %1416  ;;  %v1435_v45 = vmax.f32 %v1419_v52, %v1423_v15 }
 0x1b2   : > { %v1319_v30 = vmax.f32 %v1317_v17, %v1318_v28  ;;  %v1425_v38 = vsel %vm3145_vm10, %v1372_v29, -3.4028235e+38  ;;  %v1434_v56 = vsel %vm3206_vm14, %v1417_v10, -3.4028235e+38 }
 0x1b3   : > { %v1437_v53 = vmax.f32 %v1421_v6, %v1425_v38  ;;  %v1446_v2 = vmax.f32 %v1442_v13, %v1434_v56 }
 0x1b4   : > { %v1321_v3 = vmax.f32 %v1320_v20, %v1319_v30 }
 0x1b5   : > { %1819 = vperm.xlu1 %2596, %v1609_v7   ;;  %v1382_v31 = vpop.permute.xlu1 %1381 }
 0x1b6   : > { %1322 = vst [vmem:[#allocation3 + $0x3] sm:$0x1] %v1321_v3  ;;  %v1427_v40 = vsel %vm3163_vm13, %v1382_v31, -3.4028235e+38  ;;  %v1483_v48 = vpop.permute.xlu0 %1482 }
 0x1b7   : > { %v1439_v4 = vmax.f32 %v1435_v45, %v1427_v40 }
 0x1b9   : > { %1824 = vperm.xlu1 %2596, %v1746_v9   ;;  %v1392_v32 = vpop.permute.xlu1 %1391  ;;  %v1456_v9 = vld [vmem:[#allocation3 + $0x4] sm:$0x1] }
 0x1ba   : > { %v1429_v12 = vsel %vm3793_vm3, %v1392_v32, -3.4028235e+38  ;;  %v1498_v22 = vpop.permute.xlu0 %1497 }
 0x1bb   : > { %v1441_v41 = vmax.f32 %v1437_v53, %v1429_v12  ;;  %v1559_v44 = vsel %vm3127_vm7, %v1498_v22, -3.4028235e+38  ;;  %v1556_v12 = vsel %vm3094_vm1, %v1483_v48, -3.4028235e+38 }
 0x1bd   : > { %v1402_v16 = vpop.permute.xlu1 %1401 }
 0x1be   : > { %v1431_v49 = vsel %vm3199_vm11, %v1402_v16, -3.4028235e+38  ;;  %v1508_v27 = vpop.permute.xlu0 %1507 }
 0x1bf   : > { %v1443_v60 = vmax.f32 %v1439_v4, %v1431_v49  ;;  %v1561_v6 = vsel %vm3145_vm10, %v1508_v27, -3.4028235e+38 }
 0x1c1   : > { %v1412_v61 = vpop.permute.xlu1 %1411  ;;  %v1447_v21 = vmax.f32 %v1443_v60, %v1444_v1 }
 0x1c2   : > { %v1433_v8 = vsel %vm3211_vm15, %v1412_v61, -3.4028235e+38  ;;  %v1518_v3 = vpop.permute.xlu0 %1517 }
 0x1c3   : > { %v1445_v7 = vmax.f32 %v1441_v41, %v1433_v8  ;;  %v1563_v53 = vsel %vm3163_vm13, %v1518_v3, -3.4028235e+38 }
 0x1c5   : > { %v1448_v0 = vmax.f32 %v1445_v7, %v1446_v2 }
 0x1c6   : > { %v1478_v23 = vpop.permute.xlu1 %1477  ;;  %v1528_v15 = vpop.permute.xlu0 %1527 }
 0x1c7   : > { %v1449_v26 = vmax.f32 %v1447_v21, %v1448_v0  ;;  %v1555_v38 = vsel %vm3088_vm0, %v1478_v23, -3.4028235e+38  ;;  %v1565_v4 = vsel %vm3793_vm3, %v1528_v15, -3.4028235e+38 }
 0x1c8   : > { %v1571_v16 = vmax.f32 %v1555_v38, %v1559_v44  ;;  %v1592_v44 = vld [vmem:[#allocation3 + $0x5] sm:$0x1] }
 0x1c9   : > { %v1450_v17 = vrot.slane %v1449_v26, 4 }
 0x1ca   : > { %v1488_v28 = vpop.permute.xlu1 %1487  ;;  %v1538_v5 = vpop.permute.xlu0 %1537  ;;  %v1575_v41 = vmax.f32 %v1571_v16, %v1563_v53 }
 0x1cb   : > { %v1451_v20 = vmax.f32 %v1449_v26, %v1450_v17  ;;  %v1557_v40 = vsel %vm3110_vm4, %v1488_v28, -3.4028235e+38  ;;  %v1567_v1 = vsel %vm3199_vm11, %v1538_v5, -3.4028235e+38 }
 0x1cc   : > { %v1573_v11 = vmax.f32 %v1557_v40, %v1561_v6  ;;  %v1579_v23 = vmax.f32 %v1575_v41, %v1567_v1 }
 0x1cd   : > { %v1452_v29 = vrot.slane %v1451_v20, 2 }
 0x1ce   : > { %v1493_v30 = vpop.permute.xlu1 %1492  ;;  %v1548_v24 = vpop.permute.xlu0 %1547  ;;  %v1577_v60 = vmax.f32 %v1573_v11, %v1565_v4 }
 0x1cf   : > { %v1453_v25 = vmax.f32 %v1451_v20, %v1452_v29  ;;  %v1558_v57 = vsel %vm3100_vm2, %v1493_v30, -3.4028235e+38  ;;  %v1569_v2 = vsel %vm3211_vm15, %v1548_v24, -3.4028235e+38 }
 0x1d0   : > { %v1581_v26 = vmax.f32 %v1577_v60, %v1569_v2 }
 0x1d1   : > { %v1454_v31 = vrot.slane %v1453_v25, 1 }
 0x1d2   : > { %v1503_v10 = vpop.permute.xlu1 %1502 }
 0x1d3   : > { %v1455_v32 = vmax.f32 %v1453_v25, %v1454_v31  ;;  %v1560_v45 = vsel %vm3122_vm6, %v1503_v10, -3.4028235e+38  ;;  %v1614_v30 = vpop.permute.xlu0 %1613  ;;  %v696_v10 = vld [vmem:[#allocation2] sm:$0xff] }
 0x1d4   : > { %v1572_v19 = vmax.f32 %v1556_v12, %v1560_v45 }
 0x1d5   : > { %v1457_v34 = vmax.f32 %v1456_v9, %v1455_v32  ;;  %v697_v9 = vld [vmem:[#allocation2 + $0x8] sm:$0x1] }
 0x1d6   : > { %v1513_v52 = vpop.permute.xlu1 %1512 }
 0x1d7   : > { %1458 = vst [vmem:[#allocation3 + $0x4] sm:$0x1] %v1457_v34  ;;  %v1562_v49 = vsel %vm3140_vm9, %v1513_v52, -3.4028235e+38  ;;  %v1629_v5 = vpop.permute.xlu0 %1628 }
 0x1d8   : > { %v1574_v61 = vmax.f32 %v1558_v57, %v1562_v49 }
 0x1da   : > { %v1523_v35 = vpop.permute.xlu1 %1522 }
 0x1db   : > { %v1564_v18 = vsel %vm3158_vm12, %v1523_v35, -3.4028235e+38  ;;  %v1639_v16 = vpop.permute.xlu0 %1638 }
 0x1dc   : > { %v1576_v8 = vmax.f32 %v1572_v19, %v1564_v18 }
 0x1de   : > { %v1533_v14 = vpop.permute.xlu1 %1532 }
 0x1df   : > { %v1566_v48 = vsel %vm3794_vm5, %v1533_v14, -3.4028235e+38  ;;  %v1649_v49 = vpop.permute.xlu0 %1648 }
 0x1e0   : > { %v1578_v7 = vmax.f32 %v1574_v61, %v1566_v48 }
 0x1e2   : > { %v1543_v56 = vpop.permute.xlu1 %1542 }
 0x1e3   : > { %v1568_v13 = vsel %vm3194_vm8, %v1543_v56, -3.4028235e+38  ;;  %v1659_v4 = vpop.permute.xlu0 %1658 }
 0x1e4   : > { %v1580_v22 = vmax.f32 %v1576_v8, %v1568_v13 }
 0x1e6   : > { %v1553_v21 = vpop.permute.xlu1 %1552  ;;  %v1583_v27 = vmax.f32 %v1579_v23, %v1580_v22  ;;  %v1698_v22 = vsel %vm3140_vm9, %v1649_v49, -3.4028235e+38 }
 0x1e7   : > { %v1570_v0 = vsel %vm3206_vm14, %v1553_v21, -3.4028235e+38  ;;  %v1664_v19 = vpop.permute.xlu0 %1663 }
 0x1e8   : > { %v1582_v17 = vmax.f32 %v1578_v7, %v1570_v0  ;;  %v1696_v7 = vsel %vm3122_vm6, %v1639_v16, -3.4028235e+38 }
 0x1ea   : > { %v1584_v28 = vmax.f32 %v1581_v26, %v1582_v17  ;;  %v1691_v26 = vsel %vm3088_vm0, %v1614_v30, -3.4028235e+38  ;;  %v1694_v17 = vsel %vm3100_vm2, %v1629_v5, -3.4028235e+38  ;;  %v1700_v30 = vsel %vm3158_vm12, %v1659_v4, -3.4028235e+38 }
 0x1eb   : > { %v1619_v20 = vpop.permute.xlu1 %1618  ;;  %v1674_v48 = vpop.permute.xlu0 %1673 }
 0x1ec   : > { %v1585_v29 = vmax.f32 %v1583_v27, %v1584_v28  ;;  %v1692_v1 = vsel %vm3094_vm1, %v1619_v20, -3.4028235e+38 }
 0x1ed   : > { %v1708_v27 = vmax.f32 %v1692_v1, %v1696_v7 }
 0x1ee   : > { %v1586_v25 = vrot.slane %v1585_v29, 4 }
 0x1ef   : > { %v1624_v3 = vpop.permute.xlu1 %1623  ;;  %v1689_v41 = vpop.permute.xlu0 %1688 }
 0x1f0   : > { %v1587_v31 = vmax.f32 %v1585_v29, %v1586_v25  ;;  %v1693_v28 = vsel %vm3110_vm4, %v1624_v3, -3.4028235e+38  ;;  %v1710_v25 = vmax.f32 %v1694_v17, %v1698_v22  ;;  %v1701_v3 = vsel %vm3793_vm3, %v1664_v19, -3.4028235e+38 }
 0x1f2   : > { %v1588_v32 = vrot.slane %v1587_v31, 2  ;;  %v2395_v34 = vpop.f32.mrb[0].mxu0 }
 0x1f3   : > { %v1634_v15 = vpop.permute.xlu1 %1633  ;;  %v776_v52 = vadd.f32 %v2395_v34, %v697_v9  ;;  %v766_v35 = vpop.f32.mrb[1].mxu0 }
 0x1f4   : > { %v1589_v38 = vmax.f32 %v1587_v31, %v1588_v32  ;;  %v775_v40 = vadd.f32 %v766_v35, %v696_v10  ;;  %v1755_v61 = vpop.permute.xlu0 %1754  ;;  %v1695_v21 = vsel %vm3127_vm7, %v1634_v15, -3.4028235e+38 }
 0x1f5   : > { %778 = vst [vmem:[#allocation2 + $0x8] sm:$0x1] %v776_v52  ;;  %v1707_v31 = vmax.f32 %v1691_v26, %v1695_v21  ;;  %v1712_v52 = vmax.f32 %v1708_v27, %v1700_v30  ;;  %v1828_v1 = vsel %vm3094_vm1, %v1755_v61, -3.4028235e+38 }
 0x1f6   : > { %v1590_v14 = vrot.slane %v1589_v38, 1  ;;  %777 = vst [vmem:[#allocation2] sm:$0xff] %v775_v40 }
 0x1f7   : > { %v1644_v6 = vpop.permute.xlu1 %1643 }
 0x1f8   : > { %v1591_v45 = vmax.f32 %v1589_v38, %v1590_v14  ;;  %v1697_v0 = vsel %vm3145_vm10, %v1644_v6, -3.4028235e+38  ;;  %v1770_v23 = vpop.permute.xlu0 %1769  ;;  %v1703_v14 = vsel %vm3199_vm11, %v1674_v48, -3.4028235e+38 }
 0x1f9   : > { %v1709_v9 = vmax.f32 %v1693_v28, %v1697_v0  ;;  %v1831_v7 = vsel %vm3127_vm7, %v1770_v23, -3.4028235e+38 }
 0x1fa   : > { %v1593_v11 = vmax.f32 %v1592_v44, %v1591_v45  ;;  %v1706_v44 = vsel %vm3206_vm14, %v1689_v41, -3.4028235e+38 }
 0x1fb   : > { %v1654_v12 = vpop.permute.xlu1 %1653  ;;  %v1713_v40 = vmax.f32 %v1709_v9, %v1701_v3  ;;  %v1864_v3 = vld [vmem:[#allocation3 + $0x7] sm:$0x1] }
 0x1fc   : > { %1594 = vst [vmem:[#allocation3 + $0x5] sm:$0x1] %v1593_v11  ;;  %v1699_v20 = vsel %vm3163_vm13, %v1654_v12, -3.4028235e+38  ;;  %v1780_v35 = vpop.permute.xlu0 %1779 }
 0x1fd   : > { %v1711_v34 = vmax.f32 %v1707_v31, %v1699_v20  ;;  %v1833_v33 = vsel %vm3145_vm10, %v1780_v35, -3.4028235e+38 }
 0x1ff   : > { %v1715_v45 = vmax.f32 %v1711_v34, %v1703_v14 }
 0x200   : > { %v1750_v18 = vpop.permute.xlu1 %1749  ;;  %v1795_v19 = vpop.permute.xlu0 %1794 }
 0x201   : > { %v1827_v48 = vsel %vm3088_vm0, %v1750_v18, -3.4028235e+38  ;;  %v1836_v43 = vsel %vm3158_vm12, %v1795_v19, -3.4028235e+38 }
 0x202   : > { %v1843_v18 = vmax.f32 %v1827_v48, %v1831_v7 }
 0x204   : > { %v3513_v53 = vpop.permute.xlu1 %1759  ;;  %v1815_v50 = vpop.permute.xlu0 %1814 }
 0x205   : > { %v1829_v22 = vsel %vm3110_vm4, %v3513_v53, -3.4028235e+38  ;;  %v1840_v54 = vsel %vm3194_vm8, %v1815_v50, -3.4028235e+38 }
 0x208   : > { %v3515_v24 = vpop.permute.xlu1 %1764 }
 0x209   : > { %v1830_v39 = vsel %vm3100_vm2, %v3515_v24, -3.4028235e+38 }
 0x20c   : > { %v1775_v56 = vpop.permute.xlu1 %1774 }
 0x20d   : > { %v1832_v12 = vsel %vm3122_vm6, %v1775_v56, -3.4028235e+38 }
 0x20e   : > { %v1844_v42 = vmax.f32 %v1828_v1, %v1832_v12 }
 0x210   : > { %v3517_v57 = vpop.permute.xlu1 %1784  ;;  %v1848_v21 = vmax.f32 %v1844_v42, %v1836_v43 }
 0x211   : > { %v1834_v56 = vsel %vm3140_vm9, %v3517_v57, -3.4028235e+38 }
 0x212   : > { %v1846_v0 = vmax.f32 %v1830_v39, %v1834_v56  ;;  %v1852_v27 = vmax.f32 %v1848_v21, %v1840_v54 }
 0x215   : > { %v1669_v13 = vpop.permute.xlu1 %1668 }
 0x216   : > { %v1702_v29 = vsel %vm3794_vm5, %v1669_v13, -3.4028235e+38 }
 0x217   : > { %v1714_v15 = vmax.f32 %v1710_v25, %v1702_v29  ;;  %v1728_v25 = vld [vmem:[#allocation3 + $0x6] sm:$0x1] }
 0x219   : > { %v1718_v16 = vmax.f32 %v1714_v15, %v1706_v44 }
 0x21a   : > { %v3519_v60 = vpop.permute.xlu1 %1789 }
 0x21b   : > { %v1835_v36 = vsel %vm3163_vm13, %v3519_v60, -3.4028235e+38  ;;  %v1845_v60 = vmax.f32 %v1829_v22, %v1833_v33 }
 0x21c   : > { %v1847_v23 = vmax.f32 %v1843_v18, %v1835_v36 }
 0x21e   : > { %v3521_v8 = vpop.permute.xlu1 %1799 }
 0x21f   : > { %v1837_v46 = vsel %vm3793_vm3, %v3521_v8, -3.4028235e+38 }
 0x220   : > { %v1849_v26 = vmax.f32 %v1845_v60, %v1837_v46 }
 0x222   : > { %v3525_v2 = vpop.permute.xlu1 %1804 }
 0x223   : > { %v1838_v51 = vsel %vm3794_vm5, %v3525_v2, -3.4028235e+38 }
 0x224   : > { %v1850_v55 = vmax.f32 %v1846_v0, %v1838_v51 }
 0x227   : > { %v1679_v10 = vpop.permute.xlu1 %1678 }
 0x228   : > { %v1704_v32 = vsel %vm3194_vm8, %v1679_v10, -3.4028235e+38 }
 0x229   : > { %v1716_v5 = vmax.f32 %v1712_v52, %v1704_v32 }
 0x22b   : > { %v1684_v38 = vpop.permute.xlu1 %1683  ;;  %v1719_v49 = vmax.f32 %v1715_v45, %v1716_v5 }
 0x22c   : > { %v1705_v6 = vsel %vm3211_vm15, %v1684_v38, -3.4028235e+38 }
 0x22d   : > { %v1717_v11 = vmax.f32 %v1713_v40, %v1705_v6 }
 0x22f   : > { %v1720_v4 = vmax.f32 %v1717_v11, %v1718_v16 }
 0x230   : > { %v1810_v13 = vpop.permute.xlu1 %1809 }
 0x231   : > { %v1721_v41 = vmax.f32 %v1719_v49, %v1720_v4  ;;  %v1839_v47 = vsel %vm3199_vm11, %v1810_v13, -3.4028235e+38 }
 0x232   : > { %v1851_v8 = vmax.f32 %v1847_v23, %v1839_v47 }
 0x233   : > { %v1722_v61 = vrot.slane %v1721_v41, 4 }
 0x234   : > { %v1820_v53 = vpop.permute.xlu1 %1819  ;;  %v1855_v31 = vmax.f32 %v1851_v8, %v1852_v27 }
 0x235   : > { %v1723_v57 = vmax.f32 %v1721_v41, %v1722_v61  ;;  %v1841_v24 = vsel %vm3211_vm15, %v1820_v53, -3.4028235e+38 }
 0x236   : > { %v1853_v28 = vmax.f32 %v1849_v26, %v1841_v24 }
 0x237   : > { %v1724_v37 = vrot.slane %v1723_v57, 2 }
 0x238   : > { %v1825_v17 = vpop.permute.xlu1 %1824 }
 0x239   : > { %v1725_v2 = vmax.f32 %v1723_v57, %v1724_v37  ;;  %v1842_v59 = vsel %vm3206_vm14, %v1825_v17, -3.4028235e+38 }
 0x23a   : > { %v1854_v20 = vmax.f32 %v1850_v55, %v1842_v59 }
 0x23b   : > { %v1726_v29 = vrot.slane %v1725_v2, 1 }
 0x23c   : > { %v1856_v9 = vmax.f32 %v1853_v28, %v1854_v20 }
 0x23d   : > { %v1727_v63 = vmax.f32 %v1725_v2, %v1726_v29 }
 0x23e   : > { %v1857_v10 = vmax.f32 %v1855_v31, %v1856_v9 }
 0x23f   : > { %v1729_v30 = vmax.f32 %v1728_v25, %v1727_v63 }
 0x240   : > { %v1858_v32 = vrot.slane %v1857_v10, 4 }
 0x241   : > { %1730 = vst [vmem:[#allocation3 + $0x6] sm:$0x1] %v1729_v30 }
 0x242   : > { %v1859_v34 = vmax.f32 %v1857_v10, %v1858_v32 }
 0x244   : > { %v1860_v15 = vrot.slane %v1859_v34, 2 }
 0x246   : > { %v1861_v58 = vmax.f32 %v1859_v34, %v1860_v15 }
 0x248   : > { %v1862_v52 = vrot.slane %v1861_v58, 1 }
 0x24a   : > { %v1863_v35 = vmax.f32 %v1861_v58, %v1862_v52 }
 0x24c   : > { %v1865_v62 = vmax.f32 %v1864_v3, %v1863_v35 }
 0x24e   : > { %1866 = vst [vmem:[#allocation3 + $0x7] sm:$0x1] %v1865_v62 }
 0x24f PF: > { %p2318_p13 = scmp.ne.s32.totalorder %s2721_s30, 2 }
 0x250   : > { %v1871_v5 = vld [vmem:[#allocation2] sm:$0xff] (!%p2318_p13)  ;;  %v1872_v38 = vld [vmem:[#allocation2 + $0x8] sm:$0x1] (!%p2318_p13)  ;;  %v1874_v40 = vlaneseq (!%p2318_p13)  ;;  %s3795_s20 = sld [smem:[#allocation19_spill]] (!%p2318_p13)  ;;  %vm1929_vm0 = vcmask (!%p2318_p13), 261120   ;;  %v2753_v6 = vmov (!%p2318_p13), 0   ;;  %s3799_s17 = scalar_lea.vmem (!%p2318_p13), %s3720_s5, %s2945_s6 }
 0x251   : > { %1870 = sbr.rel (%p2318_p13) target bundleno = 1064 (0x428), region = 106  ;;  %v3597_v14 = vld [vmem:[%s2955_s23] sm:$0xff] (!%p2318_p13)  ;;  %2597 = vset.pattern.permute.xlu0 (!%p2318_p13), %v2753_v6  ;;  %2598 = vset.pattern.permute.xlu1 (!%p2318_p13), %v2753_v6  ;;  %v1873_v45 = vmax.f32 (!%p2318_p13), %v1872_v38, 1.0  ;;  %s3796_s22 = sld [smem:[#allocation20_spill]] (!%p2318_p13)  ;;  %vm1880_vm1 = vcmp.gt.f32.partialorder (!%p2318_p13), %v1872_v38, 0.0  ;;  %vm2754_vm4 = vmmov (!%p2318_p13), 1  }
 0x252   : > { %v1875_v16 = vshrl.u32 (!%p2318_p13), %v1874_v40, 7  ;;  %v2453_v11 = vpack.c.bf16 (!%p2318_p13), %v1871_v5, %v3597_v14  ;;  %s3797_s9 = sld [smem:[#allocation21_spill]] (!%p2318_p13)  ;;  %v1882_v7 = vsel (!%p2318_p13), %vm1880_vm1, 1, %v2753_v6  ;;  %s3798_s25 = sld [smem:[#allocation23_spill]] (!%p2318_p13)  ;;  %v2755_v51 = vmov (!%p2318_p13), 0.0|0.0  }
 0x253   : > { %2463 = vmatprep.subr.bf16.mxu1 (!%p2318_p13), %v2755_v51  ;;  %vm2756_vm7 = vmmov (!%p2318_p13), 0   ;;  %v2757_v57 = vmov (!%p2318_p13), 0.0   ;;  %v2319_v0 = vld [vmem:[%s3799_s17] ss:$0 sm:$0xff] (!%p2318_p13)  ;;  %s3800_s3 = sld [smem:[#allocation22_spill]] (!%p2318_p13) }
 0x254   : > { %v1876_v4 = vsub.s32 (!%p2318_p13), 0, %v1875_v16  ;;  %2454 = vmatprep.subr.bf16.mxu0 (!%p2318_p13), %v2453_v11  ;;  %2418 = vmatprep.mubr.msk.f32.mxu1 (!%p2318_p13), %vm2756_vm7, %v2757_v57 }
 0x255   : > { %2456 = vmatpush3.bf16.msra.mxu0 (!%p2318_p13), %v2453_v11  ;;  %v1881_v33 = vld [vmem:[#allocation3] sm:$0xff] (!%p2318_p13) }
 0x256   : > { %v1891_v44 = vld [vmem:[%s3795_s20] sm:$0xff] (!%p2318_p13)  ;;  %v1877_v1 = vrot.slane (!%p2318_p13), %v1873_v45, %v1876_v4  ;;  %v1886_v42 = vrot.slane (!%p2318_p13), %v1882_v7, %v1876_v4  ;;  %v1892_v39 = vld [vmem:[%s3795_s20 + $0x8] sm:$0xff] (!%p2318_p13)  ;;  %v1893_v53 = vld [vmem:[%s3795_s20 + $0x10] sm:$0xff] (!%p2318_p13) }
 0x257   : > { %2404 = vmatprep.mubr.msk.f32.mxu0 (!%p2318_p13), %vm1929_vm0, %v1891_v44  ;;  %v1895_v12 = vld [vmem:[%s3796_s22] sm:$0xff] (!%p2318_p13)  ;;  %v1897_v49 = vld [vmem:[%s3796_s22 + $0x10] sm:$0xff] (!%p2318_p13)  ;;  %v1896_v19 = vld [vmem:[%s3796_s22 + $0x8] sm:$0xff] (!%p2318_p13) }
 0x258   : > { %1901 = vperm.xlu0 %2597, %v1895_v12   ;;  %1911 = vperm.xlu1 %2598, %v1897_v49   ;;  %v1898_v13 = vld [vmem:[%s3796_s22 + $0x18] sm:$0xff]  ;;  %2599 = vrcp.f32 %v1877_v1  ;;  %v2027_v48 = vld [vmem:[%s3797_s9] sm:$0xff]  ;;  %v2028_v41 = vld [vmem:[%s3797_s9 + $0x8] sm:$0xff]  ;;  %vm1887_vm2 = vcmp.eq.s32.totalorder %v1886_v42, 1 }
 0x259   : > { %v2029_v22 = vld [vmem:[%s3797_s9 + $0x10] sm:$0xff]  ;;  %v2030_v56 = vld [vmem:[%s3797_s9 + $0x18] sm:$0xff]  ;;  %v2060_v36 = vld [vmem:[%s3798_s25] sm:$0xff] }
 0x25a   : > { %vm2458_vm6 = vmpackc.low %vm2754_vm4, %vm1887_vm2  ;;  %v1894_v46 = vld [vmem:[%s3795_s20 + $0x18] sm:$0xff]  ;;  %v2059_v35 = vld [vmem:[%s3800_s3] sm:$0xff] }
 0x25c   : > { %1906 = vperm.xlu0 %2597, %v1896_v19   ;;  %1916 = vperm.xlu1 %2598, %v1898_v13  }
 0x260   : > { %2033 = vperm.xlu0 %2597, %v2027_v48   ;;  %2038 = vperm.xlu1 %2598, %v2028_v41  }
 0x262   : > { %v2600_v61 = vpop.eup %2599 }
 0x263   : > { %v1879_v18 = vmul.f32 %v2600_v61, %v1871_v5 }
 0x264   : > { %2043 = vperm.xlu0 %2597, %v2029_v22   ;;  %2048 = vperm.xlu1 %2598, %v2030_v56  }
 0x265   : > { %v2457_v43 = vpack.c.bf16 %v1879_v18, %v1881_v33 }
 0x267   : > { %2459 = vmatprep.subr.msk.bf16.mxu0 %vm2458_vm6, %v2457_v43 }
 0x268   : > { %2063 = vperm.xlu0 %2597, %v2060_v36   ;;  %2462 = vmatpush3.bf16.msk.msra.mxu0 %vm2458_vm6, %v2457_v43 }
 0x26b   : > { %2405 = vmatmul.mubr.msk.f32.vlgmr.msra.gmra.mrb[0].mxu0 %vm1929_vm0, %v1892_v39 }
 0x26c   : > { %2407 = vmatprep.mubr.msk.f32.mxu0 %vm1929_vm0, %v1893_v53 }
 0x26f   : > { %2408 = vmatmul.mubr.msk.f32.gmra.mrb[2].mxu0 %vm1929_vm0, %v1894_v46 }
 0x2d7   : > { %v1912_v47 = vpop.permute.xlu1 %1911  ;;  %v1902_v60 = vpop.permute.xlu0 %1901 }
 0x2d8   : > { %v1925_v37 = vmul.f32 %v2319_v0, %v1902_v60  ;;  %v1927_v27 = vmul.f32 %v2319_v0, %v1912_v47 }
 0x2db   : > { %v1917_v50 = vpop.permute.xlu1 %1916  ;;  %v1907_v21 = vpop.permute.xlu0 %1906 }
 0x2dc   : > { %v1926_v23 = vmul.f32 %v2319_v0, %v1907_v21  ;;  %v1928_v2 = vmul.f32 %v2319_v0, %v1917_v50 }
 0x2df   : > { %v2039_v24 = vpop.permute.xlu1 %2038  ;;  %v2034_v55 = vpop.permute.xlu0 %2033 }
 0x2e3   : > { %v2049_v9 = vpop.permute.xlu1 %2048  ;;  %v2044_v30 = vpop.permute.xlu0 %2043 }
 0x2e7   : > { %v2064_v62 = vpop.permute.xlu0 %2063 }
 0x33e   : > { %v2406_v26 = vpop.f32.mrb[0].mxu0 }
 0x33f   : > { %v2014_v8 = vadd.f32 %v2406_v26, %v1926_v23  ;;  %v2008_v17 = vpop.f32.mrb[1].mxu0 }
 0x340   : > { %v2009_v54 = vadd.f32 %v2008_v17, %v1925_v37 }
 0x341   : > { %v2052_v59 = vadd.f32 %v2039_v24, %v2014_v8 }
 0x342   : > { %v2051_v28 = vadd.f32 %v2034_v55, %v2009_v54  ;;  %v2409_v20 = vpop.f32.mrb[2].mxu0 }
 0x343   : > { %v2056_v29 = vmax.f32 %v2052_v59, 0.0  ;;  %v2024_v25 = vadd.f32 %v2409_v20, %v1928_v2  ;;  %v2018_v31 = vpop.f32.mrb[3].mxu0 }
 0x344   : > { %v2055_v63 = vmax.f32 %v2051_v28, 0.0  ;;  %v2019_v10 = vadd.f32 %v2018_v31, %v1927_v27 }
 0x345   : > { %v2054_v32 = vadd.f32 %v2049_v9, %v2024_v25 }
 0x346   : > { %v2053_v34 = vadd.f32 %v2044_v30, %v2019_v10  ;;  %v2464_v15 = vpack.c.bf16 %v2056_v29, %v2055_v63 }
 0x347   : > { %v2058_v58 = vmax.f32 %v2054_v32, 0.0 }
 0x348   : > { %v2057_v52 = vmax.f32 %v2053_v34, 0.0  ;;  %2465 = vmatpush3.bf16.msra.mxu1 %v2464_v15 }
 0x349   : > { %2466 = vmatprep.subr.bf16.mxu1 %v2755_v51 }
 0x34a   : > { %v2467_v3 = vpack.c.bf16 %v2058_v58, %v2057_v52 }
 0x34c   : > { %2468 = vmatpush3.bf16.msra.mxu1 %v2467_v3 }
 0x34f   : > { %2419 = vmatmul.mubr.msk.f32.vlgmr.msra.gmra.mrb[0].mxu1 %vm1929_vm0, %v2059_v35 }
 0x422   : > { %v2135_v5 = vpop.f32.mrb[0].mxu1 }
 0x423   : > { %v2136_v38 = vadd.f32 %v2135_v5, %v2064_v62  ;;  %v2420_v40 = vpop.f32.mrb[1].mxu1 }
 0x425   : > { %v2139_v44 = vadd.f32 %v2136_v38, %v3597_v14 }
 0x427   : > { %2140 = vst [vmem:[%s496_s14] sm:$0xff] %v2139_v44 }
 0x428 PF: > { %s2327_s24 = sshll.u32 %s2725_s12, 7  ;;  %s3802_s18 = sld [smem:[#allocation24_spill]] }
 0x429   : > { %s2155_s10 = sshll.u32 %s496_s14, 4  ;;  %s3803_s21 = sand.u32 1, %s2705_s26   ;;  %s2156_s10 = int_to_ptr.vmem [resolvable:$true] %s2155_s10 }
 0x42a   : > { %s2142_s0 = scalar_lea.sflag [#allocation9], %s3803_s21  ;;  %s2625_s2 = scalar_lea.vmem %s2156_s10, 128 }
 0x42b   : > { %p2626_p1 = scmp.ne.s32.totalorder %s2156_s10, %s2625_s2  ;;  %s2758_s16 = smov [#allocation8]  }
 0x42c   : > { %s2629_s17 = sshll.u32 %s2758_s16, 4  ;;  %s2630_s17 = int_to_ptr.vmem [resolvable:$false] %s2629_s17 }
 0x42d   : > { %p2627_p2 = pnand %p2626_p1, %p2900_p6  ;;  %s2631_s6 = scalar_lea.vmem %s2630_s17, 256 }
 0x42e   : > { %s3659_s19 = scalar_lea.hbm %s3802_s18, %s2327_s24  ;;  %p2632_p3 = scmp.lt.s32.totalorder %s2156_s10, %s2630_s17 }
 0x42f   : > { %p2628_p0 = pneg %p2627_p2  ;;  %p2633_p4 = scmp.lt.s32.totalorder %s2631_s6, %s2625_s2 }
 0x431   : > { %p2634_p5 = por %p2633_p4, %p2632_p3 }
 0x433   : > { %p2635_p7 = pnand %p2634_p5, %p2628_p0 }
 0x435   : > { %2638 = shalt.err (!%p2635_p7)
}
 0x436   : > { %s2639_s12 = scalar_lea.hbm %s3659_s19, 128  ;;  %s2643_s30 = scalar_lea.hbm %s3802_s18, 256 }
 0x437   : > { %p2640_p8 = scmp.ne.s32.totalorder %s3659_s19, %s2639_s12  ;;  %p2644_p12 = scmp.lt.u32.totalorder %s3659_s19, %s3802_s18 }
 0x438   : > { %p2645_p13 = scmp.lt.u32.totalorder %s2643_s30, %s2639_s12  ;;  %p2647_p2 = scmp.lt.u32.totalorder %s2639_s12, %s3659_s19 }
 0x439   : > { %p2641_p9 = pnand %p2640_p8, %p2900_p6 }
 0x43a   : > { %p2646_p1 = por %p2645_p13, %p2644_p12 }
 0x43b   : > { %p2642_p11 = pneg %p2641_p9 }
 0x43c   : > { %p2648_p0 = por %p2647_p2, %p2646_p1 }
 0x43e   : > { %p2649_p3 = pnand %p2648_p0, %p2642_p11 }
 0x440   : > { %2652 = shalt.err (!%p2649_p3)
}
 0x441   : > { %2469 = dma.vmem_to_hbm [thread:$0]  (%p2900_p6), %s2156_s10, 128, %s3659_s19, %s2142_s0  }
 0x442 PF: > { %s3804_s25 = sld [smem:[#allocation12_spill]]  ;;  %p2475_p4 = scmp.ge.s32.totalorder %s2737_s15, 2 }
 0x444   : > { %p2472_p5 = pnand %p2475_p4, %p2911_p10 }
 0x448   : > { %s2167_s23 = sand.u32 1, %s3804_s25  }
 0x449   : > { %s2168_s21 = scalar_lea.sflag [#allocation9], %s2167_s23 }
 0x44a   : > { %2696 = dma.done.wait (!%p2472_p5), %s2168_s21, 128  }
 0x44b   : > { %2698 = vsyncadd (!%p2472_p5), %s2168_s21, 4294967168  ;;  %s34_s15 = sadd.s32 1, %s2737_s15   ;;  %s3805_s2 = smov %s2919_s1 }
 0x44c   : > { %p31_p7 = scmp.ge.s32.totalorder %s34_s15, 8   ;;  %s3806_s12 = sld [smem:[#allocation13_spill]] }
 0x44d   : > { %s3807_s19 = sld [smem:[#allocation14_spill]]  ;;  %s3808_s14 = sld [smem:[#allocation15_spill]] }
 0x44e   : > { %s3809_s1 = smov %s2705_s26  ;;  %s3810_s26 = smov %s2709_s27 }
 0x44f   : > { %s3811_s27 = smov %s2909_s8  ;;  %s3812_s28 = smov %s2717_s29 }
 0x450   : > { %s3813_s29 = smov %s3805_s2  ;;  %s3814_s30 = smov %s2729_s13 }
 0x451   :  { %33 = sbr.rel (!%p31_p7) target bundleno = 34 (0x22), region = 155 }
 0x453   : > { %s3815_s13 = smov %s3807_s19 }
 0x458   :  { %2173 = vsyncpa [#allocation9], 1 }
 0x459   :  { %2175 = vsyncpa [#allocation9 + $0x1], 1 }

</bundles_post_ra>
